<compile_context>
chip_gen: v5e
topology: v5e:2x2
jax: 0.10.0
libtpu: 0.0.40
codegen_flags: <defaults>
</compile_context>

<pallas_src>
import jax
import jax.numpy as jnp
from jax.experimental import pallas as pl
from jax.experimental.pallas import tpu as pltpu


# ----------------------------------------------------------------------------
# Fused kernel: full RK4 trajectory over t_span in a single invocation.
# ----------------------------------------------------------------------------
def _panode_kernel(ts_ref,                       # SMEM: t_span (T,) f32  [scalar prefetch]
                   y0_ref,                       # VMEM: (B, H) f32
                   w1_ref, b1_ref, w2_ref, b2_ref,  # VMEM: weights (bf16) / biases (f32)
                   traj_ref):                    # VMEM out: (T, B, H) f32
    T, B, H = traj_ref.shape

    # Load resident weights once; hoist bias broadcasts out of the loop.
    w1 = w1_ref[...]                                  # (H, H) bf16
    w2 = w2_ref[...]                                  # (H, H) bf16
    b1 = jnp.broadcast_to(b1_ref[...], (B, H))        # (B, H) f32
    b2 = jnp.broadcast_to(b2_ref[...], (B, H))        # (B, H) f32

    def f(t, yv):
        # MXU: bf16 x bf16 -> f32 accumulation; EUP tanh in f32.
        h = jnp.dot(yv.astype(jnp.bfloat16), w1,
                    preferred_element_type=jnp.float32)
        h = jnp.tanh(h + b1 + t)
        o = jnp.dot(h.astype(jnp.bfloat16), w2,
                    preferred_element_type=jnp.float32)
        return o + b2

    # Node 0: trajectory starts at y_init (exact f32 copy).
    y = y0_ref[...]
    traj_ref[0] = y

    # T is static at trace time -> fully unrolled loop: static SMEM scalar
    # reads and static full-tile VMEM stores, zero loop overhead.
    for i in range(T - 1):
        t0 = ts_ref[i]
        t1 = ts_ref[i + 1]
        dt = t1 - t0
        half = 0.5 * dt

        k1 = f(t0, y)
        k2 = f(t0 + half, y + half * k1)
        k3 = f(t0 + half, y + half * k2)
        k4 = f(t1, y + dt * k3)

        y = y + (dt * (1.0 / 6.0)) * (k1 + 2.0 * (k2 + k3) + k4)
        traj_ref[i + 1] = y


# ----------------------------------------------------------------------------
# PanODE forward: (t_span, traj) with traj sampled at t_span nodes.
# ----------------------------------------------------------------------------
def pan_ode_forward(y_init, t_span, params):
    """Equivalent of PanODE.forward(y_init, t_span) -> (t_span, traj)."""
    w1, b1, w2, b2 = params
    B, H = y_init.shape
    T = t_span.shape[0]

    traj = pl.pallas_call(
        _panode_kernel,
        out_shape=jax.ShapeDtypeStruct((T, B, H), jnp.float32),
        grid_spec=pltpu.PrefetchScalarGridSpec(
            num_scalar_prefetch=1,                 # t_span -> SMEM before the grid
            grid=(1,),                             # whole solve in one invocation
            in_specs=[
                pl.BlockSpec((B, H), lambda i, ts: (0, 0)),   # y_init
                pl.BlockSpec((H, H), lambda i, ts: (0, 0)),   # w1 (bf16)
                pl.BlockSpec((1, H), lambda i, ts: (0, 0)),   # b1
                pl.BlockSpec((H, H), lambda i, ts: (0, 0)),   # w2 (bf16)
                pl.BlockSpec((1, H), lambda i, ts: (0, 0)),   # b2
            ],
            out_specs=pl.BlockSpec((T, B, H), lambda i, ts: (0, 0, 0)),
        ),
        compiler_params=pltpu.CompilerParams(
            dimension_semantics=("arbitrary",),
        ),
    )(t_span.astype(jnp.float32), y_init, w1, b1, w2, b2)

    return t_span, traj


# ----------------------------------------------------------------------------
# Deterministic parameter construction (mirrors vf = 2-layer MLP __init__)
# ----------------------------------------------------------------------------
def make_params(hidden, key):
    k1, k2, k3, k4 = jax.random.split(key, 4)
    scale = 1.0 / jnp.sqrt(hidden).astype(jnp.float32)
    w1 = (jax.random.normal(k1, (hidden, hidden), jnp.float32) * scale).astype(jnp.bfloat16)
    b1 = jax.random.normal(k2, (1, hidden), jnp.float32) * 0.01
    w2 = (jax.random.normal(k3, (hidden, hidden), jnp.float32) * scale).astype(jnp.bfloat16)
    b2 = jax.random.normal(k4, (1, hidden), jnp.float32) * 0.01
    return (w1, b1, w2, b2)


if __name__ == "__main__":
    key = jax.random.PRNGKey(0)
    k_y, k_p = jax.random.split(key)

    batch, hidden, n_t = 16, 128, 8
    y_init = jax.random.normal(k_y, (batch, hidden), jnp.float32)
    t_span = jnp.linspace(0.0, 1.0, n_t, dtype=jnp.float32)
    params = make_params(hidden, k_p)

    # self.thetas = flattened concatenation of vf parameters (glue, unused in fwd)
    thetas = jnp.concatenate([p.astype(jnp.float32).reshape(-1) for p in params])

    fwd = jax.jit(pan_ode_forward)
    t_out, traj = fwd(y_init, t_span, params)
    jax.block_until_ready(traj)

    assert t_out.shape == (n_t,)
    assert traj.shape == (n_t, batch, hidden)
    assert bool(jnp.allclose(traj[0], y_init))
    assert bool(jnp.all(jnp.isfinite(traj)))

    print("KERNEL_OK")
</pallas_src>

<mosaic_0001>
module attributes {stable_mosaic.version = 11 : i64} {
  func.func @_panode_kernel(%arg0: i32, %arg1: memref<8xf32, #tpu.memory_space<smem>>, %arg2: memref<16x128xf32, #tpu.memory_space<vmem>>, %arg3: memref<128x128xbf16, #tpu.memory_space<vmem>>, %arg4: memref<1x128xf32, #tpu.memory_space<vmem>>, %arg5: memref<128x128xbf16, #tpu.memory_space<vmem>>, %arg6: memref<1x128xf32, #tpu.memory_space<vmem>>, %arg7: memref<8x16x128xf32, #tpu.memory_space<vmem>>) attributes {dimension_semantics = [#tpu.dimension_semantics<arbitrary>], iteration_bounds = array<i64: 1>, scalar_prefetch = 1 : i64, scratch_operands = 0 : i64, tpu.core_type = #tpu.core_type<tc>, window_params = [{pipeline_mode = #tpu.pipeline_mode<synchronous>, transform_indices = @transform_0, window_bounds = array<i64: 16, 128>}, {pipeline_mode = #tpu.pipeline_mode<synchronous>, transform_indices = @transform_1, window_bounds = array<i64: 128, 128>}, {pipeline_mode = #tpu.pipeline_mode<synchronous>, transform_indices = @transform_2, window_bounds = array<i64: 1, 128>}, {pipeline_mode = #tpu.pipeline_mode<synchronous>, transform_indices = @transform_3, window_bounds = array<i64: 128, 128>}, {pipeline_mode = #tpu.pipeline_mode<synchronous>, transform_indices = @transform_4, window_bounds = array<i64: 1, 128>}, {pipeline_mode = #tpu.pipeline_mode<synchronous>, transform_indices = @transform_5, window_bounds = array<i64: 8, 16, 128>}]} {
    %c0 = arith.constant 0 : index
    %c0_0 = arith.constant 0 : index
    %0 = vector.load %arg3[%c0, %c0_0] : memref<128x128xbf16, #tpu.memory_space<vmem>>, vector<128x128xbf16>
    %c0_1 = arith.constant 0 : index
    %c0_2 = arith.constant 0 : index
    %1 = vector.load %arg5[%c0_1, %c0_2] : memref<128x128xbf16, #tpu.memory_space<vmem>>, vector<128x128xbf16>
    %c0_3 = arith.constant 0 : index
    %c0_4 = arith.constant 0 : index
    %2 = vector.load %arg4[%c0_3, %c0_4] : memref<1x128xf32, #tpu.memory_space<vmem>>, vector<1x128xf32>
    %3 = vector.shape_cast %2 : vector<1x128xf32> to vector<1x128xf32>
    %4 = vector.broadcast %3 : vector<1x128xf32> to vector<16x128xf32>
    %c0_5 = arith.constant 0 : index
    %c0_6 = arith.constant 0 : index
    %5 = vector.load %arg6[%c0_5, %c0_6] : memref<1x128xf32, #tpu.memory_space<vmem>>, vector<1x128xf32>
    %6 = vector.shape_cast %5 : vector<1x128xf32> to vector<1x128xf32>
    %7 = vector.broadcast %6 : vector<1x128xf32> to vector<16x128xf32>
    %c0_7 = arith.constant 0 : index
    %c0_8 = arith.constant 0 : index
    %8 = vector.load %arg2[%c0_7, %c0_8] : memref<16x128xf32, #tpu.memory_space<vmem>>, vector<16x128xf32>
    %c0_9 = arith.constant 0 : index
    %c0_10 = arith.constant 0 : index
    %c0_11 = arith.constant 0 : index
    %9 = vector.load %arg7[%c0_9, %c0_10, %c0_11] : memref<8x16x128xf32, #tpu.memory_space<vmem>>, vector<1x16x128xf32>
    %10 = vector.shape_cast %9 : vector<1x16x128xf32> to vector<16x128xf32>
    %11 = vector.shape_cast %8 : vector<16x128xf32> to vector<1x16x128xf32>
    tpu.vector_store %arg7[%c0_9, %c0_10, %c0_11], %11 {strides = array<i32>} : memref<8x16x128xf32, #tpu.memory_space<vmem>>, vector<1x16x128xf32>,
    %c0_12 = arith.constant 0 : index
    %12 = memref.load %arg1[%c0_12] : memref<8xf32, #tpu.memory_space<smem>>
    %c1 = arith.constant 1 : index
    %13 = memref.load %arg1[%c1] : memref<8xf32, #tpu.memory_space<smem>>
    %14 = arith.subf %13, %12 : f32
    %cst = arith.constant 5.000000e-01 : f32
    %15 = arith.mulf %cst, %14 : f32
    %16 = arith.truncf %8 : vector<16x128xf32> to vector<16x128xbf16>
    %cst_13 = arith.constant dense<0.000000e+00> : vector<16x128xf32>
    %17 = tpu.matmul %16, %0, %cst_13 {dimension_numbers = #tpu.dot_dimension_numbers<[1], [0], [0], [1], [0, 0, 1, 1], [], []>} : vector<16x128xbf16>, vector<128x128xbf16>, vector<16x128xf32> -> vector<16x128xf32>
    %18 = arith.addf %17, %4 : vector<16x128xf32>
    %19 = vector.broadcast %12 : f32 to vector<16x128xf32>
    %20 = arith.addf %18, %19 : vector<16x128xf32>
    %21 = math.tanh %20 : vector<16x128xf32>
    %22 = arith.truncf %21 : vector<16x128xf32> to vector<16x128xbf16>
    %cst_14 = arith.constant dense<0.000000e+00> : vector<16x128xf32>
    %23 = tpu.matmul %22, %1, %cst_14 {dimension_numbers = #tpu.dot_dimension_numbers<[1], [0], [0], [1], [0, 0, 1, 1], [], []>} : vector<16x128xbf16>, vector<128x128xbf16>, vector<16x128xf32> -> vector<16x128xf32>
    %24 = arith.addf %23, %7 : vector<16x128xf32>
    %25 = arith.addf %12, %15 : f32
    %26 = vector.broadcast %15 : f32 to vector<16x128xf32>
    %27 = arith.mulf %26, %24 : vector<16x128xf32>
    %28 = arith.addf %8, %27 : vector<16x128xf32>
    %29 = arith.truncf %28 : vector<16x128xf32> to vector<16x128xbf16>
    %cst_15 = arith.constant dense<0.000000e+00> : vector<16x128xf32>
    %30 = tpu.matmul %29, %0, %cst_15 {dimension_numbers = #tpu.dot_dimension_numbers<[1], [0], [0], [1], [0, 0, 1, 1], [], []>} : vector<16x128xbf16>, vector<128x128xbf16>, vector<16x128xf32> -> vector<16x128xf32>
    %31 = arith.addf %30, %4 : vector<16x128xf32>
    %32 = vector.broadcast %25 : f32 to vector<16x128xf32>
    %33 = arith.addf %31, %32 : vector<16x128xf32>
    %34 = math.tanh %33 : vector<16x128xf32>
    %35 = arith.truncf %34 : vector<16x128xf32> to vector<16x128xbf16>
    %cst_16 = arith.constant dense<0.000000e+00> : vector<16x128xf32>
    %36 = tpu.matmul %35, %1, %cst_16 {dimension_numbers = #tpu.dot_dimension_numbers<[1], [0], [0], [1], [0, 0, 1, 1], [], []>} : vector<16x128xbf16>, vector<128x128xbf16>, vector<16x128xf32> -> vector<16x128xf32>
    %37 = arith.addf %36, %7 : vector<16x128xf32>
    %38 = arith.addf %12, %15 : f32
    %39 = vector.broadcast %15 : f32 to vector<16x128xf32>
    %40 = arith.mulf %39, %37 : vector<16x128xf32>
    %41 = arith.addf %8, %40 : vector<16x128xf32>
    %42 = arith.truncf %41 : vector<16x128xf32> to vector<16x128xbf16>
    %cst_17 = arith.constant dense<0.000000e+00> : vector<16x128xf32>
    %43 = tpu.matmul %42, %0, %cst_17 {dimension_numbers = #tpu.dot_dimension_numbers<[1], [0], [0], [1], [0, 0, 1, 1], [], []>} : vector<16x128xbf16>, vector<128x128xbf16>, vector<16x128xf32> -> vector<16x128xf32>
    %44 = arith.addf %43, %4 : vector<16x128xf32>
    %45 = vector.broadcast %38 : f32 to vector<16x128xf32>
    %46 = arith.addf %44, %45 : vector<16x128xf32>
    %47 = math.tanh %46 : vector<16x128xf32>
    %48 = arith.truncf %47 : vector<16x128xf32> to vector<16x128xbf16>
    %cst_18 = arith.constant dense<0.000000e+00> : vector<16x128xf32>
    %49 = tpu.matmul %48, %1, %cst_18 {dimension_numbers = #tpu.dot_dimension_numbers<[1], [0], [0], [1], [0, 0, 1, 1], [], []>} : vector<16x128xbf16>, vector<128x128xbf16>, vector<16x128xf32> -> vector<16x128xf32>
    %50 = arith.addf %49, %7 : vector<16x128xf32>
    %51 = vector.broadcast %14 : f32 to vector<16x128xf32>
    %52 = arith.mulf %51, %50 : vector<16x128xf32>
    %53 = arith.addf %8, %52 : vector<16x128xf32>
    %54 = arith.truncf %53 : vector<16x128xf32> to vector<16x128xbf16>
    %cst_19 = arith.constant dense<0.000000e+00> : vector<16x128xf32>
    %55 = tpu.matmul %54, %0, %cst_19 {dimension_numbers = #tpu.dot_dimension_numbers<[1], [0], [0], [1], [0, 0, 1, 1], [], []>} : vector<16x128xbf16>, vector<128x128xbf16>, vector<16x128xf32> -> vector<16x128xf32>
    %56 = arith.addf %55, %4 : vector<16x128xf32>
    %57 = vector.broadcast %13 : f32 to vector<16x128xf32>
    %58 = arith.addf %56, %57 : vector<16x128xf32>
    %59 = math.tanh %58 : vector<16x128xf32>
    %60 = arith.truncf %59 : vector<16x128xf32> to vector<16x128xbf16>
    %cst_20 = arith.constant dense<0.000000e+00> : vector<16x128xf32>
    %61 = tpu.matmul %60, %1, %cst_20 {dimension_numbers = #tpu.dot_dimension_numbers<[1], [0], [0], [1], [0, 0, 1, 1], [], []>} : vector<16x128xbf16>, vector<128x128xbf16>, vector<16x128xf32> -> vector<16x128xf32>
    %62 = arith.addf %61, %7 : vector<16x128xf32>
    %cst_21 = arith.constant 0.166666672 : f32
    %63 = arith.mulf %14, %cst_21 : f32
    %64 = arith.addf %37, %50 : vector<16x128xf32>
    %cst_22 = arith.constant 2.000000e+00 : f32
    %65 = vector.broadcast %cst_22 : f32 to vector<16x128xf32>
    %66 = arith.mulf %65, %64 : vector<16x128xf32>
    %67 = arith.addf %24, %66 : vector<16x128xf32>
    %68 = arith.addf %67, %62 : vector<16x128xf32>
    %69 = vector.broadcast %63 : f32 to vector<16x128xf32>
    %70 = arith.mulf %69, %68 : vector<16x128xf32>
    %71 = arith.addf %8, %70 : vector<16x128xf32>
    %c1_23 = arith.constant 1 : index
    %c0_24 = arith.constant 0 : index
    %c0_25 = arith.constant 0 : index
    %72 = vector.load %arg7[%c1_23, %c0_24, %c0_25] : memref<8x16x128xf32, #tpu.memory_space<vmem>>, vector<1x16x128xf32>
    %73 = vector.shape_cast %72 : vector<1x16x128xf32> to vector<16x128xf32>
    %74 = vector.shape_cast %71 : vector<16x128xf32> to vector<1x16x128xf32>
    tpu.vector_store %arg7[%c1_23, %c0_24, %c0_25], %74 {strides = array<i32>} : memref<8x16x128xf32, #tpu.memory_space<vmem>>, vector<1x16x128xf32>,
    %c1_26 = arith.constant 1 : index
    %75 = memref.load %arg1[%c1_26] : memref<8xf32, #tpu.memory_space<smem>>
    %c2 = arith.constant 2 : index
    %76 = memref.load %arg1[%c2] : memref<8xf32, #tpu.memory_space<smem>>
    %77 = arith.subf %76, %75 : f32
    %cst_27 = arith.constant 5.000000e-01 : f32
    %78 = arith.mulf %cst_27, %77 : f32
    %79 = arith.truncf %71 : vector<16x128xf32> to vector<16x128xbf16>
    %cst_28 = arith.constant dense<0.000000e+00> : vector<16x128xf32>
    %80 = tpu.matmul %79, %0, %cst_28 {dimension_numbers = #tpu.dot_dimension_numbers<[1], [0], [0], [1], [0, 0, 1, 1], [], []>} : vector<16x128xbf16>, vector<128x128xbf16>, vector<16x128xf32> -> vector<16x128xf32>
    %81 = arith.addf %80, %4 : vector<16x128xf32>
    %82 = vector.broadcast %75 : f32 to vector<16x128xf32>
    %83 = arith.addf %81, %82 : vector<16x128xf32>
    %84 = math.tanh %83 : vector<16x128xf32>
    %85 = arith.truncf %84 : vector<16x128xf32> to vector<16x128xbf16>
    %cst_29 = arith.constant dense<0.000000e+00> : vector<16x128xf32>
    %86 = tpu.matmul %85, %1, %cst_29 {dimension_numbers = #tpu.dot_dimension_numbers<[1], [0], [0], [1], [0, 0, 1, 1], [], []>} : vector<16x128xbf16>, vector<128x128xbf16>, vector<16x128xf32> -> vector<16x128xf32>
    %87 = arith.addf %86, %7 : vector<16x128xf32>
    %88 = arith.addf %75, %78 : f32
    %89 = vector.broadcast %78 : f32 to vector<16x128xf32>
    %90 = arith.mulf %89, %87 : vector<16x128xf32>
    %91 = arith.addf %71, %90 : vector<16x128xf32>
    %92 = arith.truncf %91 : vector<16x128xf32> to vector<16x128xbf16>
    %cst_30 = arith.constant dense<0.000000e+00> : vector<16x128xf32>
    %93 = tpu.matmul %92, %0, %cst_30 {dimension_numbers = #tpu.dot_dimension_numbers<[1], [0], [0], [1], [0, 0, 1, 1], [], []>} : vector<16x128xbf16>, vector<128x128xbf16>, vector<16x128xf32> -> vector<16x128xf32>
    %94 = arith.addf %93, %4 : vector<16x128xf32>
    %95 = vector.broadcast %88 : f32 to vector<16x128xf32>
    %96 = arith.addf %94, %95 : vector<16x128xf32>
    %97 = math.tanh %96 : vector<16x128xf32>
    %98 = arith.truncf %97 : vector<16x128xf32> to vector<16x128xbf16>
    %cst_31 = arith.constant dense<0.000000e+00> : vector<16x128xf32>
    %99 = tpu.matmul %98, %1, %cst_31 {dimension_numbers = #tpu.dot_dimension_numbers<[1], [0], [0], [1], [0, 0, 1, 1], [], []>} : vector<16x128xbf16>, vector<128x128xbf16>, vector<16x128xf32> -> vector<16x128xf32>
    %100 = arith.addf %99, %7 : vector<16x128xf32>
    %101 = arith.addf %75, %78 : f32
    %102 = vector.broadcast %78 : f32 to vector<16x128xf32>
    %103 = arith.mulf %102, %100 : vector<16x128xf32>
    %104 = arith.addf %71, %103 : vector<16x128xf32>
    %105 = arith.truncf %104 : vector<16x128xf32> to vector<16x128xbf16>
    %cst_32 = arith.constant dense<0.000000e+00> : vector<16x128xf32>
    %106 = tpu.matmul %105, %0, %cst_32 {dimension_numbers = #tpu.dot_dimension_numbers<[1], [0], [0], [1], [0, 0, 1, 1], [], []>} : vector<16x128xbf16>, vector<128x128xbf16>, vector<16x128xf32> -> vector<16x128xf32>
    %107 = arith.addf %106, %4 : vector<16x128xf32>
    %108 = vector.broadcast %101 : f32 to vector<16x128xf32>
    %109 = arith.addf %107, %108 : vector<16x128xf32>
    %110 = math.tanh %109 : vector<16x128xf32>
    %111 = arith.truncf %110 : vector<16x128xf32> to vector<16x128xbf16>
    %cst_33 = arith.constant dense<0.000000e+00> : vector<16x128xf32>
    %112 = tpu.matmul %111, %1, %cst_33 {dimension_numbers = #tpu.dot_dimension_numbers<[1], [0], [0], [1], [0, 0, 1, 1], [], []>} : vector<16x128xbf16>, vector<128x128xbf16>, vector<16x128xf32> -> vector<16x128xf32>
    %113 = arith.addf %112, %7 : vector<16x128xf32>
    %114 = vector.broadcast %77 : f32 to vector<16x128xf32>
    %115 = arith.mulf %114, %113 : vector<16x128xf32>
    %116 = arith.addf %71, %115 : vector<16x128xf32>
    %117 = arith.truncf %116 : vector<16x128xf32> to vector<16x128xbf16>
    %cst_34 = arith.constant dense<0.000000e+00> : vector<16x128xf32>
    %118 = tpu.matmul %117, %0, %cst_34 {dimension_numbers = #tpu.dot_dimension_numbers<[1], [0], [0], [1], [0, 0, 1, 1], [], []>} : vector<16x128xbf16>, vector<128x128xbf16>, vector<16x128xf32> -> vector<16x128xf32>
    %119 = arith.addf %118, %4 : vector<16x128xf32>
    %120 = vector.broadcast %76 : f32 to vector<16x128xf32>
    %121 = arith.addf %119, %120 : vector<16x128xf32>
    %122 = math.tanh %121 : vector<16x128xf32>
    %123 = arith.truncf %122 : vector<16x128xf32> to vector<16x128xbf16>
    %cst_35 = arith.constant dense<0.000000e+00> : vector<16x128xf32>
    %124 = tpu.matmul %123, %1, %cst_35 {dimension_numbers = #tpu.dot_dimension_numbers<[1], [0], [0], [1], [0, 0, 1, 1], [], []>} : vector<16x128xbf16>, vector<128x128xbf16>, vector<16x128xf32> -> vector<16x128xf32>
    %125 = arith.addf %124, %7 : vector<16x128xf32>
    %cst_36 = arith.constant 0.166666672 : f32
    %126 = arith.mulf %77, %cst_36 : f32
    %127 = arith.addf %100, %113 : vector<16x128xf32>
    %cst_37 = arith.constant 2.000000e+00 : f32
    %128 = vector.broadcast %cst_37 : f32 to vector<16x128xf32>
    %129 = arith.mulf %128, %127 : vector<16x128xf32>
    %130 = arith.addf %87, %129 : vector<16x128xf32>
    %131 = arith.addf %130, %125 : vector<16x128xf32>
    %132 = vector.broadcast %126 : f32 to vector<16x128xf32>
    %133 = arith.mulf %132, %131 : vector<16x128xf32>
    %134 = arith.addf %71, %133 : vector<16x128xf32>
    %c2_38 = arith.constant 2 : index
    %c0_39 = arith.constant 0 : index
    %c0_40 = arith.constant 0 : index
    %135 = vector.load %arg7[%c2_38, %c0_39, %c0_40] : memref<8x16x128xf32, #tpu.memory_space<vmem>>, vector<1x16x128xf32>
    %136 = vector.shape_cast %135 : vector<1x16x128xf32> to vector<16x128xf32>
    %137 = vector.shape_cast %134 : vector<16x128xf32> to vector<1x16x128xf32>
    tpu.vector_store %arg7[%c2_38, %c0_39, %c0_40], %137 {strides = array<i32>} : memref<8x16x128xf32, #tpu.memory_space<vmem>>, vector<1x16x128xf32>,
    %c2_41 = arith.constant 2 : index
    %138 = memref.load %arg1[%c2_41] : memref<8xf32, #tpu.memory_space<smem>>
    %c3 = arith.constant 3 : index
    %139 = memref.load %arg1[%c3] : memref<8xf32, #tpu.memory_space<smem>>
    %140 = arith.subf %139, %138 : f32
    %cst_42 = arith.constant 5.000000e-01 : f32
    %141 = arith.mulf %cst_42, %140 : f32
    %142 = arith.truncf %134 : vector<16x128xf32> to vector<16x128xbf16>
    %cst_43 = arith.constant dense<0.000000e+00> : vector<16x128xf32>
    %143 = tpu.matmul %142, %0, %cst_43 {dimension_numbers = #tpu.dot_dimension_numbers<[1], [0], [0], [1], [0, 0, 1, 1], [], []>} : vector<16x128xbf16>, vector<128x128xbf16>, vector<16x128xf32> -> vector<16x128xf32>
    %144 = arith.addf %143, %4 : vector<16x128xf32>
    %145 = vector.broadcast %138 : f32 to vector<16x128xf32>
    %146 = arith.addf %144, %145 : vector<16x128xf32>
    %147 = math.tanh %146 : vector<16x128xf32>
    %148 = arith.truncf %147 : vector<16x128xf32> to vector<16x128xbf16>
    %cst_44 = arith.constant dense<0.000000e+00> : vector<16x128xf32>
    %149 = tpu.matmul %148, %1, %cst_44 {dimension_numbers = #tpu.dot_dimension_numbers<[1], [0], [0], [1], [0, 0, 1, 1], [], []>} : vector<16x128xbf16>, vector<128x128xbf16>, vector<16x128xf32> -> vector<16x128xf32>
    %150 = arith.addf %149, %7 : vector<16x128xf32>
    %151 = arith.addf %138, %141 : f32
    %152 = vector.broadcast %141 : f32 to vector<16x128xf32>
    %153 = arith.mulf %152, %150 : vector<16x128xf32>
    %154 = arith.addf %134, %153 : vector<16x128xf32>
    %155 = arith.truncf %154 : vector<16x128xf32> to vector<16x128xbf16>
    %cst_45 = arith.constant dense<0.000000e+00> : vector<16x128xf32>
    %156 = tpu.matmul %155, %0, %cst_45 {dimension_numbers = #tpu.dot_dimension_numbers<[1], [0], [0], [1], [0, 0, 1, 1], [], []>} : vector<16x128xbf16>, vector<128x128xbf16>, vector<16x128xf32> -> vector<16x128xf32>
    %157 = arith.addf %156, %4 : vector<16x128xf32>
    %158 = vector.broadcast %151 : f32 to vector<16x128xf32>
    %159 = arith.addf %157, %158 : vector<16x128xf32>
    %160 = math.tanh %159 : vector<16x128xf32>
    %161 = arith.truncf %160 : vector<16x128xf32> to vector<16x128xbf16>
    %cst_46 = arith.constant dense<0.000000e+00> : vector<16x128xf32>
    %162 = tpu.matmul %161, %1, %cst_46 {dimension_numbers = #tpu.dot_dimension_numbers<[1], [0], [0], [1], [0, 0, 1, 1], [], []>} : vector<16x128xbf16>, vector<128x128xbf16>, vector<16x128xf32> -> vector<16x128xf32>
    %163 = arith.addf %162, %7 : vector<16x128xf32>
    %164 = arith.addf %138, %141 : f32
    %165 = vector.broadcast %141 : f32 to vector<16x128xf32>
    %166 = arith.mulf %165, %163 : vector<16x128xf32>
    %167 = arith.addf %134, %166 : vector<16x128xf32>
    %168 = arith.truncf %167 : vector<16x128xf32> to vector<16x128xbf16>
    %cst_47 = arith.constant dense<0.000000e+00> : vector<16x128xf32>
    %169 = tpu.matmul %168, %0, %cst_47 {dimension_numbers = #tpu.dot_dimension_numbers<[1], [0], [0], [1], [0, 0, 1, 1], [], []>} : vector<16x128xbf16>, vector<128x128xbf16>, vector<16x128xf32> -> vector<16x128xf32>
    %170 = arith.addf %169, %4 : vector<16x128xf32>
    %171 = vector.broadcast %164 : f32 to vector<16x128xf32>
    %172 = arith.addf %170, %171 : vector<16x128xf32>
    %173 = math.tanh %172 : vector<16x128xf32>
    %174 = arith.truncf %173 : vector<16x128xf32> to vector<16x128xbf16>
    %cst_48 = arith.constant dense<0.000000e+00> : vector<16x128xf32>
    %175 = tpu.matmul %174, %1, %cst_48 {dimension_numbers = #tpu.dot_dimension_numbers<[1], [0], [0], [1], [0, 0, 1, 1], [], []>} : vector<16x128xbf16>, vector<128x128xbf16>, vector<16x128xf32> -> vector<16x128xf32>
    %176 = arith.addf %175, %7 : vector<16x128xf32>
    %177 = vector.broadcast %140 : f32 to vector<16x128xf32>
    %178 = arith.mulf %177, %176 : vector<16x128xf32>
    %179 = arith.addf %134, %178 : vector<16x128xf32>
    %180 = arith.truncf %179 : vector<16x128xf32> to vector<16x128xbf16>
    %cst_49 = arith.constant dense<0.000000e+00> : vector<16x128xf32>
    %181 = tpu.matmul %180, %0, %cst_49 {dimension_numbers = #tpu.dot_dimension_numbers<[1], [0], [0], [1], [0, 0, 1, 1], [], []>} : vector<16x128xbf16>, vector<128x128xbf16>, vector<16x128xf32> -> vector<16x128xf32>
    %182 = arith.addf %181, %4 : vector<16x128xf32>
    %183 = vector.broadcast %139 : f32 to vector<16x128xf32>
    %184 = arith.addf %182, %183 : vector<16x128xf32>
    %185 = math.tanh %184 : vector<16x128xf32>
    %186 = arith.truncf %185 : vector<16x128xf32> to vector<16x128xbf16>
    %cst_50 = arith.constant dense<0.000000e+00> : vector<16x128xf32>
    %187 = tpu.matmul %186, %1, %cst_50 {dimension_numbers = #tpu.dot_dimension_numbers<[1], [0], [0], [1], [0, 0, 1, 1], [], []>} : vector<16x128xbf16>, vector<128x128xbf16>, vector<16x128xf32> -> vector<16x128xf32>
    %188 = arith.addf %187, %7 : vector<16x128xf32>
    %cst_51 = arith.constant 0.166666672 : f32
    %189 = arith.mulf %140, %cst_51 : f32
    %190 = arith.addf %163, %176 : vector<16x128xf32>
    %cst_52 = arith.constant 2.000000e+00 : f32
    %191 = vector.broadcast %cst_52 : f32 to vector<16x128xf32>
    %192 = arith.mulf %191, %190 : vector<16x128xf32>
    %193 = arith.addf %150, %192 : vector<16x128xf32>
    %194 = arith.addf %193, %188 : vector<16x128xf32>
    %195 = vector.broadcast %189 : f32 to vector<16x128xf32>
    %196 = arith.mulf %195, %194 : vector<16x128xf32>
    %197 = arith.addf %134, %196 : vector<16x128xf32>
    %c3_53 = arith.constant 3 : index
    %c0_54 = arith.constant 0 : index
    %c0_55 = arith.constant 0 : index
    %198 = vector.load %arg7[%c3_53, %c0_54, %c0_55] : memref<8x16x128xf32, #tpu.memory_space<vmem>>, vector<1x16x128xf32>
    %199 = vector.shape_cast %198 : vector<1x16x128xf32> to vector<16x128xf32>
    %200 = vector.shape_cast %197 : vector<16x128xf32> to vector<1x16x128xf32>
    tpu.vector_store %arg7[%c3_53, %c0_54, %c0_55], %200 {strides = array<i32>} : memref<8x16x128xf32, #tpu.memory_space<vmem>>, vector<1x16x128xf32>,
    %c3_56 = arith.constant 3 : index
    %201 = memref.load %arg1[%c3_56] : memref<8xf32, #tpu.memory_space<smem>>
    %c4 = arith.constant 4 : index
    %202 = memref.load %arg1[%c4] : memref<8xf32, #tpu.memory_space<smem>>
    %203 = arith.subf %202, %201 : f32
    %cst_57 = arith.constant 5.000000e-01 : f32
    %204 = arith.mulf %cst_57, %203 : f32
    %205 = arith.truncf %197 : vector<16x128xf32> to vector<16x128xbf16>
    %cst_58 = arith.constant dense<0.000000e+00> : vector<16x128xf32>
    %206 = tpu.matmul %205, %0, %cst_58 {dimension_numbers = #tpu.dot_dimension_numbers<[1], [0], [0], [1], [0, 0, 1, 1], [], []>} : vector<16x128xbf16>, vector<128x128xbf16>, vector<16x128xf32> -> vector<16x128xf32>
    %207 = arith.addf %206, %4 : vector<16x128xf32>
    %208 = vector.broadcast %201 : f32 to vector<16x128xf32>
    %209 = arith.addf %207, %208 : vector<16x128xf32>
    %210 = math.tanh %209 : vector<16x128xf32>
    %211 = arith.truncf %210 : vector<16x128xf32> to vector<16x128xbf16>
    %cst_59 = arith.constant dense<0.000000e+00> : vector<16x128xf32>
    %212 = tpu.matmul %211, %1, %cst_59 {dimension_numbers = #tpu.dot_dimension_numbers<[1], [0], [0], [1], [0, 0, 1, 1], [], []>} : vector<16x128xbf16>, vector<128x128xbf16>, vector<16x128xf32> -> vector<16x128xf32>
    %213 = arith.addf %212, %7 : vector<16x128xf32>
    %214 = arith.addf %201, %204 : f32
    %215 = vector.broadcast %204 : f32 to vector<16x128xf32>
    %216 = arith.mulf %215, %213 : vector<16x128xf32>
    %217 = arith.addf %197, %216 : vector<16x128xf32>
    %218 = arith.truncf %217 : vector<16x128xf32> to vector<16x128xbf16>
    %cst_60 = arith.constant dense<0.000000e+00> : vector<16x128xf32>
    %219 = tpu.matmul %218, %0, %cst_60 {dimension_numbers = #tpu.dot_dimension_numbers<[1], [0], [0], [1], [0, 0, 1, 1], [], []>} : vector<16x128xbf16>, vector<128x128xbf16>, vector<16x128xf32> -> vector<16x128xf32>
    %220 = arith.addf %219, %4 : vector<16x128xf32>
    %221 = vector.broadcast %214 : f32 to vector<16x128xf32>
    %222 = arith.addf %220, %221 : vector<16x128xf32>
    %223 = math.tanh %222 : vector<16x128xf32>
    %224 = arith.truncf %223 : vector<16x128xf32> to vector<16x128xbf16>
    %cst_61 = arith.constant dense<0.000000e+00> : vector<16x128xf32>
    %225 = tpu.matmul %224, %1, %cst_61 {dimension_numbers = #tpu.dot_dimension_numbers<[1], [0], [0], [1], [0, 0, 1, 1], [], []>} : vector<16x128xbf16>, vector<128x128xbf16>, vector<16x128xf32> -> vector<16x128xf32>
    %226 = arith.addf %225, %7 : vector<16x128xf32>
    %227 = arith.addf %201, %204 : f32
    %228 = vector.broadcast %204 : f32 to vector<16x128xf32>
    %229 = arith.mulf %228, %226 : vector<16x128xf32>
    %230 = arith.addf %197, %229 : vector<16x128xf32>
    %231 = arith.truncf %230 : vector<16x128xf32> to vector<16x128xbf16>
    %cst_62 = arith.constant dense<0.000000e+00> : vector<16x128xf32>
    %232 = tpu.matmul %231, %0, %cst_62 {dimension_numbers = #tpu.dot_dimension_numbers<[1], [0], [0], [1], [0, 0, 1, 1], [], []>} : vector<16x128xbf16>, vector<128x128xbf16>, vector<16x128xf32> -> vector<16x128xf32>
    %233 = arith.addf %232, %4 : vector<16x128xf32>
    %234 = vector.broadcast %227 : f32 to vector<16x128xf32>
    %235 = arith.addf %233, %234 : vector<16x128xf32>
    %236 = math.tanh %235 : vector<16x128xf32>
    %237 = arith.truncf %236 : vector<16x128xf32> to vector<16x128xbf16>
    %cst_63 = arith.constant dense<0.000000e+00> : vector<16x128xf32>
    %238 = tpu.matmul %237, %1, %cst_63 {dimension_numbers = #tpu.dot_dimension_numbers<[1], [0], [0], [1], [0, 0, 1, 1], [], []>} : vector<16x128xbf16>, vector<128x128xbf16>, vector<16x128xf32> -> vector<16x128xf32>
    %239 = arith.addf %238, %7 : vector<16x128xf32>
    %240 = vector.broadcast %203 : f32 to vector<16x128xf32>
    %241 = arith.mulf %240, %239 : vector<16x128xf32>
    %242 = arith.addf %197, %241 : vector<16x128xf32>
    %243 = arith.truncf %242 : vector<16x128xf32> to vector<16x128xbf16>
    %cst_64 = arith.constant dense<0.000000e+00> : vector<16x128xf32>
    %244 = tpu.matmul %243, %0, %cst_64 {dimension_numbers = #tpu.dot_dimension_numbers<[1], [0], [0], [1], [0, 0, 1, 1], [], []>} : vector<16x128xbf16>, vector<128x128xbf16>, vector<16x128xf32> -> vector<16x128xf32>
    %245 = arith.addf %244, %4 : vector<16x128xf32>
    %246 = vector.broadcast %202 : f32 to vector<16x128xf32>
    %247 = arith.addf %245, %246 : vector<16x128xf32>
    %248 = math.tanh %247 : vector<16x128xf32>
    %249 = arith.truncf %248 : vector<16x128xf32> to vector<16x128xbf16>
    %cst_65 = arith.constant dense<0.000000e+00> : vector<16x128xf32>
    %250 = tpu.matmul %249, %1, %cst_65 {dimension_numbers = #tpu.dot_dimension_numbers<[1], [0], [0], [1], [0, 0, 1, 1], [], []>} : vector<16x128xbf16>, vector<128x128xbf16>, vector<16x128xf32> -> vector<16x128xf32>
    %251 = arith.addf %250, %7 : vector<16x128xf32>
    %cst_66 = arith.constant 0.166666672 : f32
    %252 = arith.mulf %203, %cst_66 : f32
    %253 = arith.addf %226, %239 : vector<16x128xf32>
    %cst_67 = arith.constant 2.000000e+00 : f32
    %254 = vector.broadcast %cst_67 : f32 to vector<16x128xf32>
    %255 = arith.mulf %254, %253 : vector<16x128xf32>
    %256 = arith.addf %213, %255 : vector<16x128xf32>
    %257 = arith.addf %256, %251 : vector<16x128xf32>
    %258 = vector.broadcast %252 : f32 to vector<16x128xf32>
    %259 = arith.mulf %258, %257 : vector<16x128xf32>
    %260 = arith.addf %197, %259 : vector<16x128xf32>
    %c4_68 = arith.constant 4 : index
    %c0_69 = arith.constant 0 : index
    %c0_70 = arith.constant 0 : index
    %261 = vector.load %arg7[%c4_68, %c0_69, %c0_70] : memref<8x16x128xf32, #tpu.memory_space<vmem>>, vector<1x16x128xf32>
    %262 = vector.shape_cast %261 : vector<1x16x128xf32> to vector<16x128xf32>
    %263 = vector.shape_cast %260 : vector<16x128xf32> to vector<1x16x128xf32>
    tpu.vector_store %arg7[%c4_68, %c0_69, %c0_70], %263 {strides = array<i32>} : memref<8x16x128xf32, #tpu.memory_space<vmem>>, vector<1x16x128xf32>,
    %c4_71 = arith.constant 4 : index
    %264 = memref.load %arg1[%c4_71] : memref<8xf32, #tpu.memory_space<smem>>
    %c5 = arith.constant 5 : index
    %265 = memref.load %arg1[%c5] : memref<8xf32, #tpu.memory_space<smem>>
    %266 = arith.subf %265, %264 : f32
    %cst_72 = arith.constant 5.000000e-01 : f32
    %267 = arith.mulf %cst_72, %266 : f32
    %268 = arith.truncf %260 : vector<16x128xf32> to vector<16x128xbf16>
    %cst_73 = arith.constant dense<0.000000e+00> : vector<16x128xf32>
    %269 = tpu.matmul %268, %0, %cst_73 {dimension_numbers = #tpu.dot_dimension_numbers<[1], [0], [0], [1], [0, 0, 1, 1], [], []>} : vector<16x128xbf16>, vector<128x128xbf16>, vector<16x128xf32> -> vector<16x128xf32>
    %270 = arith.addf %269, %4 : vector<16x128xf32>
    %271 = vector.broadcast %264 : f32 to vector<16x128xf32>
    %272 = arith.addf %270, %271 : vector<16x128xf32>
    %273 = math.tanh %272 : vector<16x128xf32>
    %274 = arith.truncf %273 : vector<16x128xf32> to vector<16x128xbf16>
    %cst_74 = arith.constant dense<0.000000e+00> : vector<16x128xf32>
    %275 = tpu.matmul %274, %1, %cst_74 {dimension_numbers = #tpu.dot_dimension_numbers<[1], [0], [0], [1], [0, 0, 1, 1], [], []>} : vector<16x128xbf16>, vector<128x128xbf16>, vector<16x128xf32> -> vector<16x128xf32>
    %276 = arith.addf %275, %7 : vector<16x128xf32>
    %277 = arith.addf %264, %267 : f32
    %278 = vector.broadcast %267 : f32 to vector<16x128xf32>
    %279 = arith.mulf %278, %276 : vector<16x128xf32>
    %280 = arith.addf %260, %279 : vector<16x128xf32>
    %281 = arith.truncf %280 : vector<16x128xf32> to vector<16x128xbf16>
    %cst_75 = arith.constant dense<0.000000e+00> : vector<16x128xf32>
    %282 = tpu.matmul %281, %0, %cst_75 {dimension_numbers = #tpu.dot_dimension_numbers<[1], [0], [0], [1], [0, 0, 1, 1], [], []>} : vector<16x128xbf16>, vector<128x128xbf16>, vector<16x128xf32> -> vector<16x128xf32>
    %283 = arith.addf %282, %4 : vector<16x128xf32>
    %284 = vector.broadcast %277 : f32 to vector<16x128xf32>
    %285 = arith.addf %283, %284 : vector<16x128xf32>
    %286 = math.tanh %285 : vector<16x128xf32>
    %287 = arith.truncf %286 : vector<16x128xf32> to vector<16x128xbf16>
    %cst_76 = arith.constant dense<0.000000e+00> : vector<16x128xf32>
    %288 = tpu.matmul %287, %1, %cst_76 {dimension_numbers = #tpu.dot_dimension_numbers<[1], [0], [0], [1], [0, 0, 1, 1], [], []>} : vector<16x128xbf16>, vector<128x128xbf16>, vector<16x128xf32> -> vector<16x128xf32>
    %289 = arith.addf %288, %7 : vector<16x128xf32>
    %290 = arith.addf %264, %267 : f32
    %291 = vector.broadcast %267 : f32 to vector<16x128xf32>
    %292 = arith.mulf %291, %289 : vector<16x128xf32>
    %293 = arith.addf %260, %292 : vector<16x128xf32>
    %294 = arith.truncf %293 : vector<16x128xf32> to vector<16x128xbf16>
    %cst_77 = arith.constant dense<0.000000e+00> : vector<16x128xf32>
    %295 = tpu.matmul %294, %0, %cst_77 {dimension_numbers = #tpu.dot_dimension_numbers<[1], [0], [0], [1], [0, 0, 1, 1], [], []>} : vector<16x128xbf16>, vector<128x128xbf16>, vector<16x128xf32> -> vector<16x128xf32>
    %296 = arith.addf %295, %4 : vector<16x128xf32>
    %297 = vector.broadcast %290 : f32 to vector<16x128xf32>
    %298 = arith.addf %296, %297 : vector<16x128xf32>
    %299 = math.tanh %298 : vector<16x128xf32>
    %300 = arith.truncf %299 : vector<16x128xf32> to vector<16x128xbf16>
    %cst_78 = arith.constant dense<0.000000e+00> : vector<16x128xf32>
    %301 = tpu.matmul %300, %1, %cst_78 {dimension_numbers = #tpu.dot_dimension_numbers<[1], [0], [0], [1], [0, 0, 1, 1], [], []>} : vector<16x128xbf16>, vector<128x128xbf16>, vector<16x128xf32> -> vector<16x128xf32>
    %302 = arith.addf %301, %7 : vector<16x128xf32>
    %303 = vector.broadcast %266 : f32 to vector<16x128xf32>
    %304 = arith.mulf %303, %302 : vector<16x128xf32>
    %305 = arith.addf %260, %304 : vector<16x128xf32>
    %306 = arith.truncf %305 : vector<16x128xf32> to vector<16x128xbf16>
    %cst_79 = arith.constant dense<0.000000e+00> : vector<16x128xf32>
    %307 = tpu.matmul %306, %0, %cst_79 {dimension_numbers = #tpu.dot_dimension_numbers<[1], [0], [0], [1], [0, 0, 1, 1], [], []>} : vector<16x128xbf16>, vector<128x128xbf16>, vector<16x128xf32> -> vector<16x128xf32>
    %308 = arith.addf %307, %4 : vector<16x128xf32>
    %309 = vector.broadcast %265 : f32 to vector<16x128xf32>
    %310 = arith.addf %308, %309 : vector<16x128xf32>
    %311 = math.tanh %310 : vector<16x128xf32>
    %312 = arith.truncf %311 : vector<16x128xf32> to vector<16x128xbf16>
    %cst_80 = arith.constant dense<0.000000e+00> : vector<16x128xf32>
    %313 = tpu.matmul %312, %1, %cst_80 {dimension_numbers = #tpu.dot_dimension_numbers<[1], [0], [0], [1], [0, 0, 1, 1], [], []>} : vector<16x128xbf16>, vector<128x128xbf16>, vector<16x128xf32> -> vector<16x128xf32>
    %314 = arith.addf %313, %7 : vector<16x128xf32>
    %cst_81 = arith.constant 0.166666672 : f32
    %315 = arith.mulf %266, %cst_81 : f32
    %316 = arith.addf %289, %302 : vector<16x128xf32>
    %cst_82 = arith.constant 2.000000e+00 : f32
    %317 = vector.broadcast %cst_82 : f32 to vector<16x128xf32>
    %318 = arith.mulf %317, %316 : vector<16x128xf32>
    %319 = arith.addf %276, %318 : vector<16x128xf32>
    %320 = arith.addf %319, %314 : vector<16x128xf32>
    %321 = vector.broadcast %315 : f32 to vector<16x128xf32>
    %322 = arith.mulf %321, %320 : vector<16x128xf32>
    %323 = arith.addf %260, %322 : vector<16x128xf32>
    %c5_83 = arith.constant 5 : index
    %c0_84 = arith.constant 0 : index
    %c0_85 = arith.constant 0 : index
    %324 = vector.load %arg7[%c5_83, %c0_84, %c0_85] : memref<8x16x128xf32, #tpu.memory_space<vmem>>, vector<1x16x128xf32>
    %325 = vector.shape_cast %324 : vector<1x16x128xf32> to vector<16x128xf32>
    %326 = vector.shape_cast %323 : vector<16x128xf32> to vector<1x16x128xf32>
    tpu.vector_store %arg7[%c5_83, %c0_84, %c0_85], %326 {strides = array<i32>} : memref<8x16x128xf32, #tpu.memory_space<vmem>>, vector<1x16x128xf32>,
    %c5_86 = arith.constant 5 : index
    %327 = memref.load %arg1[%c5_86] : memref<8xf32, #tpu.memory_space<smem>>
    %c6 = arith.constant 6 : index
    %328 = memref.load %arg1[%c6] : memref<8xf32, #tpu.memory_space<smem>>
    %329 = arith.subf %328, %327 : f32
    %cst_87 = arith.constant 5.000000e-01 : f32
    %330 = arith.mulf %cst_87, %329 : f32
    %331 = arith.truncf %323 : vector<16x128xf32> to vector<16x128xbf16>
    %cst_88 = arith.constant dense<0.000000e+00> : vector<16x128xf32>
    %332 = tpu.matmul %331, %0, %cst_88 {dimension_numbers = #tpu.dot_dimension_numbers<[1], [0], [0], [1], [0, 0, 1, 1], [], []>} : vector<16x128xbf16>, vector<128x128xbf16>, vector<16x128xf32> -> vector<16x128xf32>
    %333 = arith.addf %332, %4 : vector<16x128xf32>
    %334 = vector.broadcast %327 : f32 to vector<16x128xf32>
    %335 = arith.addf %333, %334 : vector<16x128xf32>
    %336 = math.tanh %335 : vector<16x128xf32>
    %337 = arith.truncf %336 : vector<16x128xf32> to vector<16x128xbf16>
    %cst_89 = arith.constant dense<0.000000e+00> : vector<16x128xf32>
    %338 = tpu.matmul %337, %1, %cst_89 {dimension_numbers = #tpu.dot_dimension_numbers<[1], [0], [0], [1], [0, 0, 1, 1], [], []>} : vector<16x128xbf16>, vector<128x128xbf16>, vector<16x128xf32> -> vector<16x128xf32>
    %339 = arith.addf %338, %7 : vector<16x128xf32>
    %340 = arith.addf %327, %330 : f32
    %341 = vector.broadcast %330 : f32 to vector<16x128xf32>
    %342 = arith.mulf %341, %339 : vector<16x128xf32>
    %343 = arith.addf %323, %342 : vector<16x128xf32>
    %344 = arith.truncf %343 : vector<16x128xf32> to vector<16x128xbf16>
    %cst_90 = arith.constant dense<0.000000e+00> : vector<16x128xf32>
    %345 = tpu.matmul %344, %0, %cst_90 {dimension_numbers = #tpu.dot_dimension_numbers<[1], [0], [0], [1], [0, 0, 1, 1], [], []>} : vector<16x128xbf16>, vector<128x128xbf16>, vector<16x128xf32> -> vector<16x128xf32>
    %346 = arith.addf %345, %4 : vector<16x128xf32>
    %347 = vector.broadcast %340 : f32 to vector<16x128xf32>
    %348 = arith.addf %346, %347 : vector<16x128xf32>
    %349 = math.tanh %348 : vector<16x128xf32>
    %350 = arith.truncf %349 : vector<16x128xf32> to vector<16x128xbf16>
    %cst_91 = arith.constant dense<0.000000e+00> : vector<16x128xf32>
    %351 = tpu.matmul %350, %1, %cst_91 {dimension_numbers = #tpu.dot_dimension_numbers<[1], [0], [0], [1], [0, 0, 1, 1], [], []>} : vector<16x128xbf16>, vector<128x128xbf16>, vector<16x128xf32> -> vector<16x128xf32>
    %352 = arith.addf %351, %7 : vector<16x128xf32>
    %353 = arith.addf %327, %330 : f32
    %354 = vector.broadcast %330 : f32 to vector<16x128xf32>
    %355 = arith.mulf %354, %352 : vector<16x128xf32>
    %356 = arith.addf %323, %355 : vector<16x128xf32>
    %357 = arith.truncf %356 : vector<16x128xf32> to vector<16x128xbf16>
    %cst_92 = arith.constant dense<0.000000e+00> : vector<16x128xf32>
    %358 = tpu.matmul %357, %0, %cst_92 {dimension_numbers = #tpu.dot_dimension_numbers<[1], [0], [0], [1], [0, 0, 1, 1], [], []>} : vector<16x128xbf16>, vector<128x128xbf16>, vector<16x128xf32> -> vector<16x128xf32>
    %359 = arith.addf %358, %4 : vector<16x128xf32>
    %360 = vector.broadcast %353 : f32 to vector<16x128xf32>
    %361 = arith.addf %359, %360 : vector<16x128xf32>
    %362 = math.tanh %361 : vector<16x128xf32>
    %363 = arith.truncf %362 : vector<16x128xf32> to vector<16x128xbf16>
    %cst_93 = arith.constant dense<0.000000e+00> : vector<16x128xf32>
    %364 = tpu.matmul %363, %1, %cst_93 {dimension_numbers = #tpu.dot_dimension_numbers<[1], [0], [0], [1], [0, 0, 1, 1], [], []>} : vector<16x128xbf16>, vector<128x128xbf16>, vector<16x128xf32> -> vector<16x128xf32>
    %365 = arith.addf %364, %7 : vector<16x128xf32>
    %366 = vector.broadcast %329 : f32 to vector<16x128xf32>
    %367 = arith.mulf %366, %365 : vector<16x128xf32>
    %368 = arith.addf %323, %367 : vector<16x128xf32>
    %369 = arith.truncf %368 : vector<16x128xf32> to vector<16x128xbf16>
    %cst_94 = arith.constant dense<0.000000e+00> : vector<16x128xf32>
    %370 = tpu.matmul %369, %0, %cst_94 {dimension_numbers = #tpu.dot_dimension_numbers<[1], [0], [0], [1], [0, 0, 1, 1], [], []>} : vector<16x128xbf16>, vector<128x128xbf16>, vector<16x128xf32> -> vector<16x128xf32>
    %371 = arith.addf %370, %4 : vector<16x128xf32>
    %372 = vector.broadcast %328 : f32 to vector<16x128xf32>
    %373 = arith.addf %371, %372 : vector<16x128xf32>
    %374 = math.tanh %373 : vector<16x128xf32>
    %375 = arith.truncf %374 : vector<16x128xf32> to vector<16x128xbf16>
    %cst_95 = arith.constant dense<0.000000e+00> : vector<16x128xf32>
    %376 = tpu.matmul %375, %1, %cst_95 {dimension_numbers = #tpu.dot_dimension_numbers<[1], [0], [0], [1], [0, 0, 1, 1], [], []>} : vector<16x128xbf16>, vector<128x128xbf16>, vector<16x128xf32> -> vector<16x128xf32>
    %377 = arith.addf %376, %7 : vector<16x128xf32>
    %cst_96 = arith.constant 0.166666672 : f32
    %378 = arith.mulf %329, %cst_96 : f32
    %379 = arith.addf %352, %365 : vector<16x128xf32>
    %cst_97 = arith.constant 2.000000e+00 : f32
    %380 = vector.broadcast %cst_97 : f32 to vector<16x128xf32>
    %381 = arith.mulf %380, %379 : vector<16x128xf32>
    %382 = arith.addf %339, %381 : vector<16x128xf32>
    %383 = arith.addf %382, %377 : vector<16x128xf32>
    %384 = vector.broadcast %378 : f32 to vector<16x128xf32>
    %385 = arith.mulf %384, %383 : vector<16x128xf32>
    %386 = arith.addf %323, %385 : vector<16x128xf32>
    %c6_98 = arith.constant 6 : index
    %c0_99 = arith.constant 0 : index
    %c0_100 = arith.constant 0 : index
    %387 = vector.load %arg7[%c6_98, %c0_99, %c0_100] : memref<8x16x128xf32, #tpu.memory_space<vmem>>, vector<1x16x128xf32>
    %388 = vector.shape_cast %387 : vector<1x16x128xf32> to vector<16x128xf32>
    %389 = vector.shape_cast %386 : vector<16x128xf32> to vector<1x16x128xf32>
    tpu.vector_store %arg7[%c6_98, %c0_99, %c0_100], %389 {strides = array<i32>} : memref<8x16x128xf32, #tpu.memory_space<vmem>>, vector<1x16x128xf32>,
    %c6_101 = arith.constant 6 : index
    %390 = memref.load %arg1[%c6_101] : memref<8xf32, #tpu.memory_space<smem>>
    %c7 = arith.constant 7 : index
    %391 = memref.load %arg1[%c7] : memref<8xf32, #tpu.memory_space<smem>>
    %392 = arith.subf %391, %390 : f32
    %cst_102 = arith.constant 5.000000e-01 : f32
    %393 = arith.mulf %cst_102, %392 : f32
    %394 = arith.truncf %386 : vector<16x128xf32> to vector<16x128xbf16>
    %cst_103 = arith.constant dense<0.000000e+00> : vector<16x128xf32>
    %395 = tpu.matmul %394, %0, %cst_103 {dimension_numbers = #tpu.dot_dimension_numbers<[1], [0], [0], [1], [0, 0, 1, 1], [], []>} : vector<16x128xbf16>, vector<128x128xbf16>, vector<16x128xf32> -> vector<16x128xf32>
    %396 = arith.addf %395, %4 : vector<16x128xf32>
    %397 = vector.broadcast %390 : f32 to vector<16x128xf32>
    %398 = arith.addf %396, %397 : vector<16x128xf32>
    %399 = math.tanh %398 : vector<16x128xf32>
    %400 = arith.truncf %399 : vector<16x128xf32> to vector<16x128xbf16>
    %cst_104 = arith.constant dense<0.000000e+00> : vector<16x128xf32>
    %401 = tpu.matmul %400, %1, %cst_104 {dimension_numbers = #tpu.dot_dimension_numbers<[1], [0], [0], [1], [0, 0, 1, 1], [], []>} : vector<16x128xbf16>, vector<128x128xbf16>, vector<16x128xf32> -> vector<16x128xf32>
    %402 = arith.addf %401, %7 : vector<16x128xf32>
    %403 = arith.addf %390, %393 : f32
    %404 = vector.broadcast %393 : f32 to vector<16x128xf32>
    %405 = arith.mulf %404, %402 : vector<16x128xf32>
    %406 = arith.addf %386, %405 : vector<16x128xf32>
    %407 = arith.truncf %406 : vector<16x128xf32> to vector<16x128xbf16>
    %cst_105 = arith.constant dense<0.000000e+00> : vector<16x128xf32>
    %408 = tpu.matmul %407, %0, %cst_105 {dimension_numbers = #tpu.dot_dimension_numbers<[1], [0], [0], [1], [0, 0, 1, 1], [], []>} : vector<16x128xbf16>, vector<128x128xbf16>, vector<16x128xf32> -> vector<16x128xf32>
    %409 = arith.addf %408, %4 : vector<16x128xf32>
    %410 = vector.broadcast %403 : f32 to vector<16x128xf32>
    %411 = arith.addf %409, %410 : vector<16x128xf32>
    %412 = math.tanh %411 : vector<16x128xf32>
    %413 = arith.truncf %412 : vector<16x128xf32> to vector<16x128xbf16>
    %cst_106 = arith.constant dense<0.000000e+00> : vector<16x128xf32>
    %414 = tpu.matmul %413, %1, %cst_106 {dimension_numbers = #tpu.dot_dimension_numbers<[1], [0], [0], [1], [0, 0, 1, 1], [], []>} : vector<16x128xbf16>, vector<128x128xbf16>, vector<16x128xf32> -> vector<16x128xf32>
    %415 = arith.addf %414, %7 : vector<16x128xf32>
    %416 = arith.addf %390, %393 : f32
    %417 = vector.broadcast %393 : f32 to vector<16x128xf32>
    %418 = arith.mulf %417, %415 : vector<16x128xf32>
    %419 = arith.addf %386, %418 : vector<16x128xf32>
    %420 = arith.truncf %419 : vector<16x128xf32> to vector<16x128xbf16>
    %cst_107 = arith.constant dense<0.000000e+00> : vector<16x128xf32>
    %421 = tpu.matmul %420, %0, %cst_107 {dimension_numbers = #tpu.dot_dimension_numbers<[1], [0], [0], [1], [0, 0, 1, 1], [], []>} : vector<16x128xbf16>, vector<128x128xbf16>, vector<16x128xf32> -> vector<16x128xf32>
    %422 = arith.addf %421, %4 : vector<16x128xf32>
    %423 = vector.broadcast %416 : f32 to vector<16x128xf32>
    %424 = arith.addf %422, %423 : vector<16x128xf32>
    %425 = math.tanh %424 : vector<16x128xf32>
    %426 = arith.truncf %425 : vector<16x128xf32> to vector<16x128xbf16>
    %cst_108 = arith.constant dense<0.000000e+00> : vector<16x128xf32>
    %427 = tpu.matmul %426, %1, %cst_108 {dimension_numbers = #tpu.dot_dimension_numbers<[1], [0], [0], [1], [0, 0, 1, 1], [], []>} : vector<16x128xbf16>, vector<128x128xbf16>, vector<16x128xf32> -> vector<16x128xf32>
    %428 = arith.addf %427, %7 : vector<16x128xf32>
    %429 = vector.broadcast %392 : f32 to vector<16x128xf32>
    %430 = arith.mulf %429, %428 : vector<16x128xf32>
    %431 = arith.addf %386, %430 : vector<16x128xf32>
    %432 = arith.truncf %431 : vector<16x128xf32> to vector<16x128xbf16>
    %cst_109 = arith.constant dense<0.000000e+00> : vector<16x128xf32>
    %433 = tpu.matmul %432, %0, %cst_109 {dimension_numbers = #tpu.dot_dimension_numbers<[1], [0], [0], [1], [0, 0, 1, 1], [], []>} : vector<16x128xbf16>, vector<128x128xbf16>, vector<16x128xf32> -> vector<16x128xf32>
    %434 = arith.addf %433, %4 : vector<16x128xf32>
    %435 = vector.broadcast %391 : f32 to vector<16x128xf32>
    %436 = arith.addf %434, %435 : vector<16x128xf32>
    %437 = math.tanh %436 : vector<16x128xf32>
    %438 = arith.truncf %437 : vector<16x128xf32> to vector<16x128xbf16>
    %cst_110 = arith.constant dense<0.000000e+00> : vector<16x128xf32>
    %439 = tpu.matmul %438, %1, %cst_110 {dimension_numbers = #tpu.dot_dimension_numbers<[1], [0], [0], [1], [0, 0, 1, 1], [], []>} : vector<16x128xbf16>, vector<128x128xbf16>, vector<16x128xf32> -> vector<16x128xf32>
    %440 = arith.addf %439, %7 : vector<16x128xf32>
    %cst_111 = arith.constant 0.166666672 : f32
    %441 = arith.mulf %392, %cst_111 : f32
    %442 = arith.addf %415, %428 : vector<16x128xf32>
    %cst_112 = arith.constant 2.000000e+00 : f32
    %443 = vector.broadcast %cst_112 : f32 to vector<16x128xf32>
    %444 = arith.mulf %443, %442 : vector<16x128xf32>
    %445 = arith.addf %402, %444 : vector<16x128xf32>
    %446 = arith.addf %445, %440 : vector<16x128xf32>
    %447 = vector.broadcast %441 : f32 to vector<16x128xf32>
    %448 = arith.mulf %447, %446 : vector<16x128xf32>
    %449 = arith.addf %386, %448 : vector<16x128xf32>
    %c7_113 = arith.constant 7 : index
    %c0_114 = arith.constant 0 : index
    %c0_115 = arith.constant 0 : index
    %450 = vector.load %arg7[%c7_113, %c0_114, %c0_115] : memref<8x16x128xf32, #tpu.memory_space<vmem>>, vector<1x16x128xf32>
    %451 = vector.shape_cast %450 : vector<1x16x128xf32> to vector<16x128xf32>
    %452 = vector.shape_cast %449 : vector<16x128xf32> to vector<1x16x128xf32>
    tpu.vector_store %arg7[%c7_113, %c0_114, %c0_115], %452 {strides = array<i32>} : memref<8x16x128xf32, #tpu.memory_space<vmem>>, vector<1x16x128xf32>,
    return
  }
  func.func @transform_0(%arg0: i32, %arg1: memref<8xf32, #tpu.memory_space<smem>>) -> (i32, i32) {
    %c0_i32 = arith.constant 0 : i32
    %c0_i32_0 = arith.constant 0 : i32
    %c0_i32_1 = arith.constant 0 : i32
    return %c0_i32, %c0_i32_0 : i32, i32
  }
  func.func @transform_1(%arg0: i32, %arg1: memref<8xf32, #tpu.memory_space<smem>>) -> (i32, i32) {
    %c0_i32 = arith.constant 0 : i32
    %c0_i32_0 = arith.constant 0 : i32
    %c0_i32_1 = arith.constant 0 : i32
    return %c0_i32, %c0_i32_0 : i32, i32
  }
  func.func @transform_2(%arg0: i32, %arg1: memref<8xf32, #tpu.memory_space<smem>>) -> (i32, i32) {
    %c0_i32 = arith.constant 0 : i32
    %c0_i32_0 = arith.constant 0 : i32
    %c0_i32_1 = arith.constant 0 : i32
    return %c0_i32, %c0_i32_0 : i32, i32
  }
  func.func @transform_3(%arg0: i32, %arg1: memref<8xf32, #tpu.memory_space<smem>>) -> (i32, i32) {
    %c0_i32 = arith.constant 0 : i32
    %c0_i32_0 = arith.constant 0 : i32
    %c0_i32_1 = arith.constant 0 : i32
    return %c0_i32, %c0_i32_0 : i32, i32
  }
  func.func @transform_4(%arg0: i32, %arg1: memref<8xf32, #tpu.memory_space<smem>>) -> (i32, i32) {
    %c0_i32 = arith.constant 0 : i32
    %c0_i32_0 = arith.constant 0 : i32
    %c0_i32_1 = arith.constant 0 : i32
    return %c0_i32, %c0_i32_0 : i32, i32
  }
  func.func @transform_5(%arg0: i32, %arg1: memref<8xf32, #tpu.memory_space<smem>>) -> (i32, i32, i32) {
    %c0_i32 = arith.constant 0 : i32
    %c0_i32_0 = arith.constant 0 : i32
    %c0_i32_1 = arith.constant 0 : i32
    %c0_i32_2 = arith.constant 0 : i32
    return %c0_i32, %c0_i32_0, %c0_i32_1 : i32, i32, i32
  }
}

</mosaic_0001>

<bundles_post_ra>
// kernel: pan_ode_forward.1
= control target key start
LH: loop header
LB: loop body
LE: loop exit
PB: predicated region body
PF: predicated region fallthrough
CT: control target
= control target key end

     0   :  { %s1870_s24 = smov [#allocation3]   ;;  %s2845_s0 = inlined_call_operand.vmem [shape: f32[8], index: 0, kind: input, shape index: {}]   ;;  %s2846_s1 = inlined_call_operand.hbm [shape: f32[16,128], index: 1, kind: input, shape index: {}]   ;;  %s2847_s2 = inlined_call_operand.hbm [shape: bf16[128,128], index: 2, kind: input, shape index: {}]   ;;  %s2848_s3 = inlined_call_operand.hbm [shape: f32[1,128], index: 3, kind: input, shape index: {}]   ;;  %s2849_s4 = inlined_call_operand.hbm [shape: bf16[128,128], index: 4, kind: input, shape index: {}]   ;;  %s2850_s5 = inlined_call_operand.vmem [shape: f32[1,128], index: 5, kind: input, shape index: {}]   ;;  %s2851_s6 = inlined_call_operand.hbm [shape: f32[8,16,128], index: 6, kind: output, shape index: {}]  }
   0x1   :  { %s12_s23 = sshll.u32 %s2845_s0, 4  ;;  %s13_s23 = int_to_ptr.vmem [resolvable:$true] %s12_s23 }
   0x2   :  { %15 = dma.vmem_to_smem %s13_s23, 16, %s1870_s24, [#allocation2] }
   0x3   :  { %1860 = dma.done.wait [#allocation2], 16 }
   0x4   :  { %1861 = vsyncadd [#allocation2], 4294967280 }
   0x5   :  { %18 = sfence }
   0x6   :  { %19 = vsyncpa [#allocation5], 0 }
   0x7   :  { %20 = vsyncpa [#allocation8], 0 }
   0x8   :  { %21 = vsyncpa [#allocation11], 0  ;;  %s40_s27 = sshll.u32 %s2847_s2, 4  ;;  %s41_s27 = int_to_ptr.hbm [resolvable:$true] %s40_s27 }
   0x9   :  { %22 = vsyncpa [#allocation6], 0  ;;  %s1871_s28 = smov [#allocation7]   ;;  %s27_s7 = sshll.u32 %s2846_s1, 4  ;;  %s28_s7 = int_to_ptr.hbm [resolvable:$true] %s27_s7 }
   0xa   :  { %s42_s29 = sshll.u32 %s1871_s28, 4  ;;  %s1872_s8 = smov 64   ;;  %s43_s29 = int_to_ptr.vmem [resolvable:$true] %s42_s29 }
   0xb   :  { %s1873_s9 = smov 4   ;;  %s1874_s10 = smov [#allocation4]  }
   0xc   :  { %48 = dma.hbm_to_vmem [thread:$0]  %s41_s27, 1024, %s43_s29, [#allocation8], %s1872_s8, %s1872_s8, %s1873_s9  }
   0xd   :  { %s29_s11 = sshll.u32 %s1874_s10, 4  ;;  %s1875_s12 = smov 128   ;;  %s30_s11 = int_to_ptr.vmem [resolvable:$true] %s29_s11 }
   0xe   :  { %s1876_s13 = smov 8   ;;  %s54_s15 = sshll.u32 %s2848_s3, 4  ;;  %s55_s15 = int_to_ptr.hbm [resolvable:$true] %s54_s15 }
   0xf   :  { %35 = dma.hbm_to_vmem [thread:$0]  %s28_s7, 256, %s30_s11, [#allocation5], %s1875_s12, %s1875_s12, %s1876_s13  }
  0x10   :  { %s1877_s16 = smov [#allocation9]   ;;  %s64_s19 = sshll.u32 %s2849_s4, 4  ;;  %s65_s19 = int_to_ptr.hbm [resolvable:$true] %s64_s19 }
  0x11   :  { %s56_s1 = sshll.u32 %s1877_s16, 4  ;;  %s1878_s20 = smov [#allocation10]   ;;  %s57_s1 = int_to_ptr.vmem [resolvable:$true] %s56_s1 }
  0x12   :  { %59 = dma.hbm_to_vmem [thread:$0]  %s55_s15, 16, %s57_s1, [#allocation8]  }
  0x13   :  { %s66_s21 = sshll.u32 %s1878_s20, 4  ;;  %s67_s21 = int_to_ptr.vmem [resolvable:$true] %s66_s21 }
  0x14   :  { %72 = dma.hbm_to_vmem [thread:$0]  %s65_s19, 1024, %s67_s21, [#allocation11], %s1872_s8, %s1872_s8, %s1873_s9  }
  0x15   :  { %1862 = dma.done.wait [#allocation5], 256  }
  0x16   :  { %1863 = vsyncadd [#allocation5], 4294967040 }
  0x17   :  { %1864 = dma.done.wait [#allocation8], 1040  }
  0x18   :  { %1865 = vsyncadd [#allocation8], 4294966256 }
  0x19   :  { %1866 = dma.done.wait [#allocation11], 1024  }
  0x1a   :  { %1867 = vsyncadd [#allocation11], 4294966272  ;;  %v1933_v0 = vld [vmem:[#allocation7 + $0x38] sm:$0xff]  ;;  %v1936_v1 = vld [vmem:[#allocation7 + $0x30] sm:$0xff]  ;;  %s2035_s3 = sld [smem:[#allocation3]] }
  0x1b   :  { %188 = vmatpush.bf16.msra.mxu0 %v1933_v0  ;;  %v1938_v2 = vld [vmem:[#allocation4] sm:$0xff]  ;;  %277 = vmatpush.bf16.msra.mxu2 %v1933_v0  ;;  %v1941_v3 = vld [vmem:[#allocation4 + $0x8] sm:$0xff]  ;;  %v1952_v6 = vld [vmem:[#allocation7 + $0x28] sm:$0xff]  ;;  %s2060_s4 = sld [smem:[#allocation3 + $0x1]] }
  0x1c   :  { %133 = vst [vmem:[#allocation12] sm:$0xff] %v1938_v2  ;;  %v1944_v4 = vld [vmem:[#allocation10 + $0x38] sm:$0xff]  ;;  %v1948_v5 = vld [vmem:[#allocation10 + $0x30] sm:$0xff]  ;;  %v1956_v7 = vld [vmem:[#allocation10 + $0x28] sm:$0xff]  ;;  %v139_v13 = vpack.c.bf16 %v1941_v3, %v1938_v2  ;;  %s2188_s28 = sld [smem:[#allocation3 + $0x2]] }
  0x1d   :  { %134 = vst [vmem:[#allocation12 + $0x8] sm:$0xff] %v1941_v3  ;;  %256 = vmatpush.bf16.msra.mxu1 %v1944_v4  ;;  %297 = vmatpush.bf16.msra.mxu3 %v1944_v4  ;;  %v1960_v8 = vld [vmem:[#allocation7 + $0x20] sm:$0xff]  ;;  %v1966_v9 = vld [vmem:[#allocation7 + $0x18] sm:$0xff]  ;;  %v1970_v10 = vld [vmem:[#allocation7 + $0x10] sm:$0xff]  ;;  %s2311_s8 = sld [smem:[#allocation3 + $0x3]] }
  0x1e   :  { %v1974_v11 = vld [vmem:[#allocation7 + $0x8] sm:$0xff]  ;;  %v1978_v12 = vld [vmem:[#allocation7] sm:$0xff]  ;;  %v2017_v16 = vld [vmem:[#allocation10 + $0x10] sm:$0xff]  ;;  %s2468_s14 = sld [smem:[#allocation3 + $0x4]] }
  0x1f   :  { %189 = vmatpush.bf16.msra.mxu0 %v1936_v1  ;;  %278 = vmatpush.bf16.msra.mxu2 %v1936_v1  ;;  %v2009_v14 = vld [vmem:[#allocation10 + $0x20] sm:$0xff]  ;;  %v2013_v15 = vld [vmem:[#allocation10 + $0x18] sm:$0xff]  ;;  %v2021_v17 = vld [vmem:[#allocation10 + $0x8] sm:$0xff]  ;;  %s2596_s20 = sld [smem:[#allocation3 + $0x5]] }
  0x20   :  { %v2024_v18 = vld [vmem:[#allocation10] sm:$0xff]  ;;  %v2037_v19 = vld [vmem:[#allocation9] ss:$0 sm:$0xff]  ;;  %v202_v22 = vstv %s2035_s3  ;;  %v2069_v31 = vld [vmem:[%s2850_s5] ss:$0 sm:$0xff]  ;;  %s2719_s23 = sld [smem:[#allocation3 + $0x6]] }
  0x21   :  { %257 = vmatpush.bf16.msra.mxu1 %v1948_v5  ;;  %298 = vmatpush.bf16.msra.mxu3 %v1948_v5  ;;  %s2064_s22 = ssub.f32 %s2060_s4, %s2035_s3 }
  0x22   :  { %s2192_s29 = ssub.f32 %s2188_s28, %s2060_s4 }
  0x23   :  { %190 = vmatpush.bf16.msra.mxu0 %v1952_v6  ;;  %279 = vmatpush.bf16.msra.mxu2 %v1952_v6  ;;  %s138_s25 = smul.f32 0.5, %s2064_s22  ;;  %s2315_s9 = ssub.f32 %s2311_s8, %s2188_s28 }
  0x24   :  { %s389_s27 = smul.f32 0.16666667, %s2064_s22  ;;  %s2472_s15 = ssub.f32 %s2468_s14, %s2311_s8 }
  0x25   :  { %258 = vmatpush.bf16.msra.mxu1 %v1956_v7  ;;  %299 = vmatpush.bf16.msra.mxu3 %v1956_v7  ;;  %v271_v33 = vstv %s138_s25  ;;  %s270_s26 = sadd.f32 %s138_s25, %s2035_s3  ;;  %s409_s30 = smul.f32 0.5, %s2192_s29 }
  0x26   :  { %s564_s7 = smul.f32 0.16666667, %s2192_s29  ;;  %s2600_s21 = ssub.f32 %s2596_s20, %s2468_s14 }
  0x27   :  { %191 = vmatpush.bf16.msra.mxu0 %v1960_v8  ;;  %280 = vmatpush.bf16.msra.mxu2 %v1960_v8  ;;  %v291_v43 = vstv %s270_s26  ;;  %s445_s0 = sadd.f32 %s2060_s4, %s409_s30  ;;  %s584_s10 = smul.f32 0.5, %s2315_s9 }
  0x28   :  { %s739_s2 = smul.f32 0.16666667, %s2315_s9  ;;  %s2723_s24 = ssub.f32 %s2719_s23, %s2596_s20 }
  0x29   :  { %259 = vmatpush.bf16.msra.mxu1 %v2009_v14  ;;  %300 = vmatpush.bf16.msra.mxu3 %v2009_v14  ;;  %s620_s11 = sadd.f32 %s2188_s28, %s584_s10  ;;  %s759_s16 = smul.f32 0.5, %s2472_s15 }
  0x2a   :  { %s914_s19 = smul.f32 0.16666667, %s2472_s15 }
  0x2b   :  { %192 = vmatpush.bf16.msra.mxu0 %v1966_v9  ;;  %281 = vmatpush.bf16.msra.mxu2 %v1966_v9  ;;  %s795_s18 = sadd.f32 %s2311_s8, %s759_s16  ;;  %s934_s3 = smul.f32 0.5, %s2600_s21 }
  0x2c   :  { %s1109_s25 = smul.f32 0.5, %s2723_s24 }
  0x2d   :  { %260 = vmatpush.bf16.msra.mxu1 %v2013_v15  ;;  %301 = vmatpush.bf16.msra.mxu3 %v2013_v15 }
  0x2e   :  { %s1145_s26 = sadd.f32 %s2596_s20, %s1109_s25 }
  0x2f   :  { %193 = vmatpush.bf16.msra.mxu0 %v1970_v10  ;;  %282 = vmatpush.bf16.msra.mxu2 %v1970_v10 }
  0x31   :  { %261 = vmatpush.bf16.msra.mxu1 %v2017_v16  ;;  %302 = vmatpush.bf16.msra.mxu3 %v2017_v16 }
  0x33   :  { %194 = vmatpush.bf16.msra.mxu0 %v1974_v11  ;;  %283 = vmatpush.bf16.msra.mxu2 %v1974_v11 }
  0x35   :  { %262 = vmatpush.bf16.msra.mxu1 %v2021_v17  ;;  %303 = vmatpush.bf16.msra.mxu3 %v2021_v17 }
  0x37   :  { %195 = vmatpush.bf16.msra.mxu0 %v1978_v12  ;;  %284 = vmatpush.bf16.msra.mxu2 %v1978_v12 }
  0x39   :  { %263 = vmatpush.bf16.msra.mxu1 %v2024_v18  ;;  %304 = vmatpush.bf16.msra.mxu3 %v2024_v18 }
  0x3a   :  { %196 = vmatmul.bf16.vlgmr.msra.gmra.mxu0 %v139_v13 }
  0x3b   :  { %316 = vmatpush.bf16.msrb.mxu0 %v1933_v0  ;;  %355 = vmatpush.bf16.msrb.mxu2 %v1933_v0 }
  0x3d   :  { %335 = vmatpush.bf16.msrb.mxu1 %v1944_v4  ;;  %375 = vmatpush.bf16.msrb.mxu3 %v1944_v4 }
  0x3f   :  { %317 = vmatpush.bf16.msrb.mxu0 %v1936_v1  ;;  %356 = vmatpush.bf16.msrb.mxu2 %v1936_v1 }
  0x41   :  { %336 = vmatpush.bf16.msrb.mxu1 %v1948_v5  ;;  %376 = vmatpush.bf16.msrb.mxu3 %v1948_v5 }
  0x43   :  { %318 = vmatpush.bf16.msrb.mxu0 %v1952_v6  ;;  %357 = vmatpush.bf16.msrb.mxu2 %v1952_v6 }
  0x45   :  { %337 = vmatpush.bf16.msrb.mxu1 %v1956_v7  ;;  %377 = vmatpush.bf16.msrb.mxu3 %v1956_v7 }
  0x47   :  { %319 = vmatpush.bf16.msrb.mxu0 %v1960_v8  ;;  %358 = vmatpush.bf16.msrb.mxu2 %v1960_v8 }
  0x49   :  { %338 = vmatpush.bf16.msrb.mxu1 %v2009_v14  ;;  %378 = vmatpush.bf16.msrb.mxu3 %v2009_v14 }
  0x4b   :  { %320 = vmatpush.bf16.msrb.mxu0 %v1966_v9  ;;  %359 = vmatpush.bf16.msrb.mxu2 %v1966_v9 }
  0x4d   :  { %339 = vmatpush.bf16.msrb.mxu1 %v2013_v15  ;;  %379 = vmatpush.bf16.msrb.mxu3 %v2013_v15 }
  0x4f   :  { %321 = vmatpush.bf16.msrb.mxu0 %v1970_v10  ;;  %360 = vmatpush.bf16.msrb.mxu2 %v1970_v10 }
  0x51   :  { %340 = vmatpush.bf16.msrb.mxu1 %v2017_v16  ;;  %380 = vmatpush.bf16.msrb.mxu3 %v2017_v16 }
  0x53   :  { %322 = vmatpush.bf16.msrb.mxu0 %v1974_v11  ;;  %361 = vmatpush.bf16.msrb.mxu2 %v1974_v11 }
  0x55   :  { %341 = vmatpush.bf16.msrb.mxu1 %v2021_v17  ;;  %381 = vmatpush.bf16.msrb.mxu3 %v2021_v17 }
  0x57   :  { %323 = vmatpush.bf16.msrb.mxu0 %v1978_v12  ;;  %362 = vmatpush.bf16.msrb.mxu2 %v1978_v12 }
  0x59   :  { %342 = vmatpush.bf16.msrb.mxu1 %v2024_v18  ;;  %382 = vmatpush.bf16.msrb.mxu3 %v2024_v18 }
  0x5b   :  { %411 = vmatpush.bf16.msra.mxu0 %v1933_v0 }
  0x5f   :  { %412 = vmatpush.bf16.msra.mxu0 %v1936_v1 }
  0x63   :  { %413 = vmatpush.bf16.msra.mxu0 %v1952_v6 }
  0x67   :  { %414 = vmatpush.bf16.msra.mxu0 %v1960_v8 }
  0x6b   :  { %415 = vmatpush.bf16.msra.mxu0 %v1966_v9 }
  0x6f   :  { %416 = vmatpush.bf16.msra.mxu0 %v1970_v10 }
  0x73   :  { %417 = vmatpush.bf16.msra.mxu0 %v1974_v11 }
  0x77   :  { %418 = vmatpush.bf16.msra.mxu0 %v1978_v12 }
  0xb7   :  { %v197_v20 = vpop.f32.mrf.mxu0 }
  0xb8   :  { %v198_v21 = vadd.f32 %v2037_v19, %v197_v20 }
  0xba   :  { %v203_v23 = vadd.f32 %v202_v22, %v198_v21 }
  0xbc   :  { %1582 = vtanh.f32 %v203_v23 }
  0xbf   :  { %v199_v24 = vpop.f32.mrf.mxu0 }
  0xc0   :  { %v200_v25 = vadd.f32 %v2037_v19, %v199_v24 }
  0xc2   :  { %v204_v26 = vadd.f32 %v202_v22, %v200_v25  ;;  %v1583_v27 = vpop.eup %1582 }
  0xc4   :  { %1584 = vtanh.f32 %v204_v26  ;;  %v349_v26 = vstv %s2064_s22  ;;  %s1089_s22 = smul.f32 0.16666667, %s2600_s21 }
  0xca   :  { %v1585_v28 = vpop.eup %1584 }
  0xcb   :  { %v207_v29 = vpack.c.bf16 %v1585_v28, %v1583_v27 }
  0xcd   :  { %264 = vmatmul.bf16.vlgmr.msra.gmra.mxu1 %v207_v29 }
  0xce   :  { %431 = vmatpush.bf16.msra.mxu1 %v1944_v4 }
  0xd2   :  { %432 = vmatpush.bf16.msra.mxu1 %v1948_v5 }
  0xd6   :  { %433 = vmatpush.bf16.msra.mxu1 %v1956_v7 }
  0xda   :  { %434 = vmatpush.bf16.msra.mxu1 %v2009_v14 }
  0xde   :  { %435 = vmatpush.bf16.msra.mxu1 %v2013_v15 }
  0xe2   :  { %436 = vmatpush.bf16.msra.mxu1 %v2017_v16 }
  0xe6   :  { %437 = vmatpush.bf16.msra.mxu1 %v2021_v17 }
  0xea   :  { %438 = vmatpush.bf16.msra.mxu1 %v2024_v18 }
 0x14a   :  { %v265_v30 = vpop.f32.mrf.mxu1 }
 0x14b   :  { %v2073_v32 = vadd.f32 %v2069_v31, %v265_v30 }
 0x14d   :  { %v272_v35 = vmul.f32 %v271_v33, %v2073_v32 }
 0x14f   :  { %v274_v38 = vadd.f32 %v272_v35, %v1938_v2 }
 0x152   :  { %v267_v34 = vpop.f32.mrf.mxu1 }
 0x153   :  { %v2077_v36 = vadd.f32 %v2069_v31, %v267_v34 }
 0x155   :  { %v273_v37 = vmul.f32 %v271_v33, %v2077_v36 }
 0x157   :  { %v275_v39 = vadd.f32 %v273_v37, %v1941_v3 }
 0x159   :  { %v276_v40 = vpack.c.bf16 %v275_v39, %v274_v38  ;;  %v369_v39 = vstv %s2060_s4  ;;  %s970_s4 = sadd.f32 %s2468_s14, %s934_s3 }
 0x15b   :  { %285 = vmatmul.bf16.vlgmr.msra.gmra.mxu2 %v276_v40 }
 0x15c   :  { %452 = vmatpush.bf16.msra.mxu2 %v1933_v0 }
 0x160   :  { %453 = vmatpush.bf16.msra.mxu2 %v1936_v1 }
 0x164   :  { %454 = vmatpush.bf16.msra.mxu2 %v1952_v6 }
 0x168   :  { %455 = vmatpush.bf16.msra.mxu2 %v1960_v8 }
 0x16c   :  { %456 = vmatpush.bf16.msra.mxu2 %v1966_v9 }
 0x170   :  { %457 = vmatpush.bf16.msra.mxu2 %v1970_v10 }
 0x174   :  { %458 = vmatpush.bf16.msra.mxu2 %v1974_v11 }
 0x178   :  { %459 = vmatpush.bf16.msra.mxu2 %v1978_v12 }
 0x1de   :  { %v286_v41 = vpop.f32.mrf.mxu2 }
 0x1df   :  { %v287_v42 = vadd.f32 %v2037_v19, %v286_v41 }
 0x1e1   :  { %v292_v44 = vadd.f32 %v291_v43, %v287_v42 }
 0x1e3   :  { %1586 = vtanh.f32 %v292_v44 }
 0x1e6   :  { %v288_v45 = vpop.f32.mrf.mxu2 }
 0x1e7   :  { %v289_v46 = vadd.f32 %v2037_v19, %v288_v45 }
 0x1e9   :  { %v293_v47 = vadd.f32 %v291_v43, %v289_v46  ;;  %v1587_v48 = vpop.eup %1586 }
 0x1eb   :  { %1588 = vtanh.f32 %v293_v47 }
 0x1f1   :  { %v1589_v49 = vpop.eup %1588 }
 0x1f2   :  { %v296_v50 = vpack.c.bf16 %v1589_v49, %v1587_v48 }
 0x1f4   :  { %305 = vmatmul.bf16.vlgmr.msra.gmra.mxu3 %v296_v50 }
 0x1f5   :  { %472 = vmatpush.bf16.msra.mxu3 %v1944_v4 }
 0x1f9   :  { %473 = vmatpush.bf16.msra.mxu3 %v1948_v5 }
 0x1fd   :  { %474 = vmatpush.bf16.msra.mxu3 %v1956_v7 }
 0x201   :  { %475 = vmatpush.bf16.msra.mxu3 %v2009_v14 }
 0x205   :  { %476 = vmatpush.bf16.msra.mxu3 %v2013_v15 }
 0x209   :  { %477 = vmatpush.bf16.msra.mxu3 %v2017_v16 }
 0x20d   :  { %478 = vmatpush.bf16.msra.mxu3 %v2021_v17 }
 0x211   :  { %479 = vmatpush.bf16.msra.mxu3 %v2024_v18 }
 0x277   :  { %v306_v51 = vpop.f32.mrf.mxu3 }
 0x278   :  { %v2102_v52 = vadd.f32 %v2069_v31, %v306_v51 }
 0x27a   :  { %v311_v54 = vmul.f32 %v2102_v52, %v271_v33 }
 0x27c   :  { %v313_v57 = vadd.f32 %v311_v54, %v1938_v2  ;;  %v398_v54 = vstv %s389_s27  ;;  %s1264_s27 = smul.f32 0.16666667, %s2723_s24 }
 0x27f   :  { %v308_v53 = vpop.f32.mrf.mxu3 }
 0x280   :  { %v2106_v55 = vadd.f32 %v2069_v31, %v308_v53 }
 0x282   :  { %v312_v56 = vmul.f32 %v2106_v55, %v271_v33 }
 0x284   :  { %v314_v58 = vadd.f32 %v312_v56, %v1941_v3 }
 0x286   :  { %v315_v59 = vpack.c.bf16 %v314_v58, %v313_v57 }
 0x288   :  { %324 = vmatmul.bf16.vlgmr.msrb.gmra.mxu0 %v315_v59 }
 0x289   :  { %491 = vmatpush.bf16.msrb.mxu0 %v1933_v0 }
 0x28d   :  { %492 = vmatpush.bf16.msrb.mxu0 %v1936_v1 }
 0x291   :  { %493 = vmatpush.bf16.msrb.mxu0 %v1952_v6 }
 0x295   :  { %494 = vmatpush.bf16.msrb.mxu0 %v1960_v8 }
 0x299   :  { %495 = vmatpush.bf16.msrb.mxu0 %v1966_v9 }
 0x29d   :  { %496 = vmatpush.bf16.msrb.mxu0 %v1970_v10 }
 0x2a1   :  { %497 = vmatpush.bf16.msrb.mxu0 %v1974_v11 }
 0x2a5   :  { %498 = vmatpush.bf16.msrb.mxu0 %v1978_v12 }
 0x305   :  { %v325_v60 = vpop.f32.mrf.mxu0 }
 0x306   :  { %v326_v61 = vadd.f32 %v2037_v19, %v325_v60 }
 0x308   :  { %v330_v62 = vadd.f32 %v326_v61, %v291_v43 }
 0x30a   :  { %1590 = vtanh.f32 %v330_v62 }
 0x30d   :  { %v327_v63 = vpop.f32.mrf.mxu0 }
 0x30e   :  { %v328_v13 = vadd.f32 %v2037_v19, %v327_v63 }
 0x310   :  { %v331_v20 = vadd.f32 %v328_v13, %v291_v43  ;;  %v1591_v21 = vpop.eup %1590 }
 0x312   :  { %1592 = vtanh.f32 %v331_v20 }
 0x318   :  { %v1593_v22 = vpop.eup %1592 }
 0x319   :  { %v334_v23 = vpack.c.bf16 %v1593_v22, %v1591_v21 }
 0x31b   :  { %343 = vmatmul.bf16.vlgmr.msrb.gmra.mxu1 %v334_v23 }
 0x31c   :  { %510 = vmatpush.bf16.msrb.mxu1 %v1944_v4 }
 0x320   :  { %511 = vmatpush.bf16.msrb.mxu1 %v1948_v5 }
 0x324   :  { %512 = vmatpush.bf16.msrb.mxu1 %v1956_v7 }
 0x328   :  { %513 = vmatpush.bf16.msrb.mxu1 %v2009_v14 }
 0x32c   :  { %514 = vmatpush.bf16.msrb.mxu1 %v2013_v15 }
 0x330   :  { %515 = vmatpush.bf16.msrb.mxu1 %v2017_v16 }
 0x334   :  { %516 = vmatpush.bf16.msrb.mxu1 %v2021_v17 }
 0x338   :  { %517 = vmatpush.bf16.msrb.mxu1 %v2024_v18 }
 0x398   :  { %v344_v24 = vpop.f32.mrf.mxu1 }
 0x399   :  { %v345_v25 = vadd.f32 %v2069_v31, %v344_v24 }
 0x39b   :  { %v350_v28 = vmul.f32 %v349_v26, %v345_v25  ;;  %v390_v47 = vadd.f32 %v345_v25, %v2102_v52 }
 0x39d   :  { %v352_v33 = vadd.f32 %v350_v28, %v1938_v2  ;;  %v392_v48 = vmul.f32 2.0, %v390_v47 }
 0x39f   :  { %v394_v53 = vadd.f32 %v392_v48, %v2073_v32 }
 0x3a0   :  { %v346_v27 = vpop.f32.mrf.mxu1 }
 0x3a1   :  { %v347_v29 = vadd.f32 %v2069_v31, %v346_v27  ;;  %v446_v27 = vstv %s409_s30 }
 0x3a3   :  { %v351_v30 = vmul.f32 %v349_v26, %v347_v29  ;;  %v391_v50 = vadd.f32 %v347_v29, %v2106_v55 }
 0x3a5   :  { %v353_v34 = vadd.f32 %v351_v30, %v1941_v3  ;;  %v393_v57 = vmul.f32 2.0, %v391_v50 }
 0x3a7   :  { %v354_v35 = vpack.c.bf16 %v353_v34, %v352_v33  ;;  %v395_v61 = vadd.f32 %v393_v57, %v2077_v36 }
 0x3a9   :  { %363 = vmatmul.bf16.vlgmr.msrb.gmra.mxu2 %v354_v35 }
 0x3aa   :  { %530 = vmatpush.bf16.msrb.mxu2 %v1933_v0 }
 0x3ae   :  { %531 = vmatpush.bf16.msrb.mxu2 %v1936_v1 }
 0x3b2   :  { %532 = vmatpush.bf16.msrb.mxu2 %v1952_v6 }
 0x3b6   :  { %533 = vmatpush.bf16.msrb.mxu2 %v1960_v8 }
 0x3ba   :  { %534 = vmatpush.bf16.msrb.mxu2 %v1966_v9 }
 0x3be   :  { %535 = vmatpush.bf16.msrb.mxu2 %v1970_v10 }
 0x3c2   :  { %536 = vmatpush.bf16.msrb.mxu2 %v1974_v11 }
 0x3c6   :  { %537 = vmatpush.bf16.msrb.mxu2 %v1978_v12 }
 0x42c   :  { %v364_v37 = vpop.f32.mrf.mxu2 }
 0x42d   :  { %v365_v38 = vadd.f32 %v2037_v19, %v364_v37 }
 0x42f   :  { %v370_v40 = vadd.f32 %v369_v39, %v365_v38 }
 0x431   :  { %1594 = vtanh.f32 %v370_v40  ;;  %v466_v40 = vstv %s445_s0 }
 0x434   :  { %v366_v41 = vpop.f32.mrf.mxu2 }
 0x435   :  { %v367_v42 = vadd.f32 %v2037_v19, %v366_v41 }
 0x437   :  { %v371_v43 = vadd.f32 %v369_v39, %v367_v42  ;;  %v1595_v44 = vpop.eup %1594 }
 0x439   :  { %1596 = vtanh.f32 %v371_v43 }
 0x43f   :  { %v1597_v45 = vpop.eup %1596 }
 0x440   :  { %v374_v46 = vpack.c.bf16 %v1597_v45, %v1595_v44 }
 0x442   :  { %383 = vmatmul.bf16.vlgmr.msrb.gmra.mxu3 %v374_v46 }
 0x443   :  { %550 = vmatpush.bf16.msrb.mxu3 %v1944_v4 }
 0x447   :  { %551 = vmatpush.bf16.msrb.mxu3 %v1948_v5 }
 0x44b   :  { %552 = vmatpush.bf16.msrb.mxu3 %v1956_v7 }
 0x44f   :  { %553 = vmatpush.bf16.msrb.mxu3 %v2009_v14 }
 0x453   :  { %554 = vmatpush.bf16.msrb.mxu3 %v2013_v15 }
 0x457   :  { %555 = vmatpush.bf16.msrb.mxu3 %v2017_v16 }
 0x45b   :  { %556 = vmatpush.bf16.msrb.mxu3 %v2021_v17 }
 0x45f   :  { %557 = vmatpush.bf16.msrb.mxu3 %v2024_v18 }
 0x4c5   :  { %v384_v49 = vpop.f32.mrf.mxu3 }
 0x4c6   :  { %v385_v51 = vadd.f32 %v2069_v31, %v384_v49 }
 0x4c8   :  { %v396_v56 = vadd.f32 %v394_v53, %v385_v51 }
 0x4ca   :  { %v399_v58 = vmul.f32 %v398_v54, %v396_v56 }
 0x4cc   :  { %v2159_v59 = vadd.f32 %v399_v58, %v1938_v2 }
 0x4cd   :  { %v386_v60 = vpop.f32.mrf.mxu3 }
 0x4ce   :  { %404 = vst [vmem:[#allocation12 + $0x10] sm:$0xff] %v2159_v59  ;;  %v387_v52 = vadd.f32 %v2069_v31, %v386_v60 }
 0x4d0   :  { %v397_v62 = vadd.f32 %v395_v61, %v387_v52 }
 0x4d2   :  { %v400_v55 = vmul.f32 %v398_v54, %v397_v62 }
 0x4d4   :  { %v2165_v63 = vadd.f32 %v400_v55, %v1941_v3 }
 0x4d6   :  { %405 = vst [vmem:[#allocation12 + $0x18] sm:$0xff] %v2165_v63  ;;  %v410_v32 = vpack.c.bf16 %v2165_v63, %v2159_v59 }
 0x4d8   :  { %419 = vmatmul.bf16.vlgmr.msra.gmra.mxu0 %v410_v32 }
 0x4d9   :  { %586 = vmatpush.bf16.msra.mxu0 %v1933_v0 }
 0x4dd   :  { %587 = vmatpush.bf16.msra.mxu0 %v1936_v1 }
 0x4e1   :  { %588 = vmatpush.bf16.msra.mxu0 %v1952_v6 }
 0x4e5   :  { %589 = vmatpush.bf16.msra.mxu0 %v1960_v8 }
 0x4e9   :  { %590 = vmatpush.bf16.msra.mxu0 %v1966_v9 }
 0x4ed   :  { %591 = vmatpush.bf16.msra.mxu0 %v1970_v10 }
 0x4f1   :  { %592 = vmatpush.bf16.msra.mxu0 %v1974_v11 }
 0x4f5   :  { %593 = vmatpush.bf16.msra.mxu0 %v1978_v12 }
 0x555   :  { %v420_v2 = vpop.f32.mrf.mxu0 }
 0x556   :  { %v421_v3 = vadd.f32 %v2037_v19, %v420_v2 }
 0x558   :  { %v426_v36 = vadd.f32 %v421_v3, %v369_v39 }
 0x55a   :  { %1598 = vtanh.f32 %v426_v36 }
 0x55d   :  { %v422_v13 = vpop.f32.mrf.mxu0 }
 0x55e   :  { %v423_v20 = vadd.f32 %v2037_v19, %v422_v13 }
 0x560   :  { %v427_v21 = vadd.f32 %v423_v20, %v369_v39  ;;  %v1599_v22 = vpop.eup %1598 }
 0x562   :  { %1600 = vtanh.f32 %v427_v21  ;;  %v524_v21 = vstv %s2192_s29 }
 0x568   :  { %v1601_v23 = vpop.eup %1600 }
 0x569   :  { %v430_v24 = vpack.c.bf16 %v1601_v23, %v1599_v22 }
 0x56b   :  { %439 = vmatmul.bf16.vlgmr.msra.gmra.mxu1 %v430_v24 }
 0x56c   :  { %606 = vmatpush.bf16.msra.mxu1 %v1944_v4 }
 0x570   :  { %607 = vmatpush.bf16.msra.mxu1 %v1948_v5 }
 0x574   :  { %608 = vmatpush.bf16.msra.mxu1 %v1956_v7 }
 0x578   :  { %609 = vmatpush.bf16.msra.mxu1 %v2009_v14 }
 0x57c   :  { %610 = vmatpush.bf16.msra.mxu1 %v2013_v15 }
 0x580   :  { %611 = vmatpush.bf16.msra.mxu1 %v2017_v16 }
 0x584   :  { %612 = vmatpush.bf16.msra.mxu1 %v2021_v17 }
 0x588   :  { %613 = vmatpush.bf16.msra.mxu1 %v2024_v18 }
 0x5e8   :  { %v440_v25 = vpop.f32.mrf.mxu1 }
 0x5e9   :  { %v2196_v26 = vadd.f32 %v2069_v31, %v440_v25 }
 0x5eb   :  { %v447_v29 = vmul.f32 %v446_v27, %v2196_v26 }
 0x5ed   :  { %v449_v34 = vadd.f32 %v447_v29, %v2159_v59 }
 0x5f0   :  { %v442_v28 = vpop.f32.mrf.mxu1 }
 0x5f1   :  { %v2200_v30 = vadd.f32 %v2069_v31, %v442_v28 }
 0x5f3   :  { %v448_v33 = vmul.f32 %v446_v27, %v2200_v30 }
 0x5f5   :  { %v450_v35 = vadd.f32 %v448_v33, %v2165_v63 }
 0x5f7   :  { %v451_v37 = vpack.c.bf16 %v450_v35, %v449_v34  ;;  %v544_v35 = vstv %s2188_s28  ;;  %s2807_s28 = sld [smem:[#allocation3 + $0x7]] }
 0x5f9   :  { %460 = vmatmul.bf16.vlgmr.msra.gmra.mxu2 %v451_v37 }
 0x5fa   :  { %627 = vmatpush.bf16.msra.mxu2 %v1933_v0 }
 0x5fd   :  { %s2811_s29 = ssub.f32 %s2807_s28, %s2719_s23 }
 0x5fe   :  { %628 = vmatpush.bf16.msra.mxu2 %v1936_v1 }
 0x5ff   :  { %s1284_s30 = smul.f32 0.5, %s2811_s29 }
 0x601   :  { %s1320_s0 = sadd.f32 %s2719_s23, %s1284_s30 }
 0x602   :  { %629 = vmatpush.bf16.msra.mxu2 %v1952_v6 }
 0x606   :  { %630 = vmatpush.bf16.msra.mxu2 %v1960_v8 }
 0x60a   :  { %631 = vmatpush.bf16.msra.mxu2 %v1966_v9 }
 0x60e   :  { %632 = vmatpush.bf16.msra.mxu2 %v1970_v10 }
 0x612   :  { %633 = vmatpush.bf16.msra.mxu2 %v1974_v11 }
 0x616   :  { %634 = vmatpush.bf16.msra.mxu2 %v1978_v12 }
 0x67c   :  { %v461_v38 = vpop.f32.mrf.mxu2 }
 0x67d   :  { %v462_v39 = vadd.f32 %v2037_v19, %v461_v38 }
 0x67f   :  { %v467_v41 = vadd.f32 %v466_v40, %v462_v39 }
 0x681   :  { %1602 = vtanh.f32 %v467_v41 }
 0x684   :  { %v463_v42 = vpop.f32.mrf.mxu2 }
 0x685   :  { %v464_v43 = vadd.f32 %v2037_v19, %v463_v42 }
 0x687   :  { %v468_v44 = vadd.f32 %v466_v40, %v464_v43  ;;  %v1603_v45 = vpop.eup %1602 }
 0x689   :  { %1604 = vtanh.f32 %v468_v44 }
 0x68f   :  { %v1605_v46 = vpop.eup %1604 }
 0x690   :  { %v471_v47 = vpack.c.bf16 %v1605_v46, %v1603_v45 }
 0x692   :  { %480 = vmatmul.bf16.vlgmr.msra.gmra.mxu3 %v471_v47 }
 0x693   :  { %647 = vmatpush.bf16.msra.mxu3 %v1944_v4 }
 0x697   :  { %648 = vmatpush.bf16.msra.mxu3 %v1948_v5 }
 0x69b   :  { %649 = vmatpush.bf16.msra.mxu3 %v1956_v7 }
 0x69f   :  { %650 = vmatpush.bf16.msra.mxu3 %v2009_v14 }
 0x6a3   :  { %651 = vmatpush.bf16.msra.mxu3 %v2013_v15 }
 0x6a7   :  { %652 = vmatpush.bf16.msra.mxu3 %v2017_v16 }
 0x6ab   :  { %653 = vmatpush.bf16.msra.mxu3 %v2021_v17 }
 0x6af   :  { %654 = vmatpush.bf16.msra.mxu3 %v2024_v18 }
 0x715   :  { %v481_v48 = vpop.f32.mrf.mxu3 }
 0x716   :  { %v2225_v49 = vadd.f32 %v2069_v31, %v481_v48 }
 0x718   :  { %v486_v51 = vmul.f32 %v2225_v49, %v446_v27 }
 0x71a   :  { %v488_v56 = vadd.f32 %v486_v51, %v2159_v59  ;;  %v573_v51 = vstv %s564_s7 }
 0x71d   :  { %v483_v50 = vpop.f32.mrf.mxu3 }
 0x71e   :  { %v2229_v53 = vadd.f32 %v2069_v31, %v483_v50 }
 0x720   :  { %v487_v54 = vmul.f32 %v2229_v53, %v446_v27 }
 0x722   :  { %v489_v57 = vadd.f32 %v487_v54, %v2165_v63 }
 0x724   :  { %v490_v58 = vpack.c.bf16 %v489_v57, %v488_v56 }
 0x726   :  { %499 = vmatmul.bf16.vlgmr.msrb.gmra.mxu0 %v490_v58 }
 0x727   :  { %666 = vmatpush.bf16.msrb.mxu0 %v1933_v0 }
 0x72b   :  { %667 = vmatpush.bf16.msrb.mxu0 %v1936_v1 }
 0x72f   :  { %668 = vmatpush.bf16.msrb.mxu0 %v1952_v6 }
 0x733   :  { %669 = vmatpush.bf16.msrb.mxu0 %v1960_v8 }
 0x737   :  { %670 = vmatpush.bf16.msrb.mxu0 %v1966_v9 }
 0x73b   :  { %671 = vmatpush.bf16.msrb.mxu0 %v1970_v10 }
 0x73f   :  { %672 = vmatpush.bf16.msrb.mxu0 %v1974_v11 }
 0x743   :  { %673 = vmatpush.bf16.msrb.mxu0 %v1978_v12 }
 0x7a3   :  { %v500_v60 = vpop.f32.mrf.mxu0 }
 0x7a4   :  { %v501_v52 = vadd.f32 %v2037_v19, %v500_v60 }
 0x7a6   :  { %v505_v61 = vadd.f32 %v501_v52, %v466_v40 }
 0x7a8   :  { %1606 = vtanh.f32 %v505_v61 }
 0x7ab   :  { %v502_v62 = vpop.f32.mrf.mxu0 }
 0x7ac   :  { %v503_v55 = vadd.f32 %v2037_v19, %v502_v62 }
 0x7ae   :  { %v506_v32 = vadd.f32 %v503_v55, %v466_v40  ;;  %v1607_v2 = vpop.eup %1606 }
 0x7b0   :  { %1608 = vtanh.f32 %v506_v32 }
 0x7b6   :  { %v1609_v3 = vpop.eup %1608 }
 0x7b7   :  { %v509_v36 = vpack.c.bf16 %v1609_v3, %v1607_v2 }
 0x7b9   :  { %518 = vmatmul.bf16.vlgmr.msrb.gmra.mxu1 %v509_v36 }
 0x7ba   :  { %685 = vmatpush.bf16.msrb.mxu1 %v1944_v4 }
 0x7be   :  { %686 = vmatpush.bf16.msrb.mxu1 %v1948_v5 }
 0x7c2   :  { %687 = vmatpush.bf16.msrb.mxu1 %v1956_v7 }
 0x7c6   :  { %688 = vmatpush.bf16.msrb.mxu1 %v2009_v14 }
 0x7ca   :  { %689 = vmatpush.bf16.msrb.mxu1 %v2013_v15 }
 0x7ce   :  { %690 = vmatpush.bf16.msrb.mxu1 %v2017_v16 }
 0x7d2   :  { %691 = vmatpush.bf16.msrb.mxu1 %v2021_v17 }
 0x7d6   :  { %692 = vmatpush.bf16.msrb.mxu1 %v2024_v18 }
 0x836   :  { %v519_v13 = vpop.f32.mrf.mxu1 }
 0x837   :  { %v520_v20 = vadd.f32 %v2069_v31, %v519_v13 }
 0x839   :  { %v525_v23 = vmul.f32 %v524_v21, %v520_v20  ;;  %v565_v44 = vadd.f32 %v520_v20, %v2225_v49 }
 0x83b   :  { %v527_v27 = vadd.f32 %v525_v23, %v2159_v59  ;;  %v567_v45 = vmul.f32 2.0, %v565_v44 }
 0x83d   :  { %v569_v50 = vadd.f32 %v567_v45, %v2196_v26 }
 0x83e   :  { %v521_v22 = vpop.f32.mrf.mxu1 }
 0x83f   :  { %v522_v24 = vadd.f32 %v2069_v31, %v521_v22  ;;  %v621_v22 = vstv %s584_s10 }
 0x841   :  { %v526_v25 = vmul.f32 %v524_v21, %v522_v24  ;;  %v566_v47 = vadd.f32 %v522_v24, %v2229_v53 }
 0x843   :  { %v528_v28 = vadd.f32 %v526_v25, %v2165_v63  ;;  %v568_v56 = vmul.f32 2.0, %v566_v47 }
 0x845   :  { %v529_v29 = vpack.c.bf16 %v528_v28, %v527_v27  ;;  %v570_v52 = vadd.f32 %v568_v56, %v2200_v30 }
 0x847   :  { %538 = vmatmul.bf16.vlgmr.msrb.gmra.mxu2 %v529_v29 }
 0x848   :  { %705 = vmatpush.bf16.msrb.mxu2 %v1933_v0 }
 0x84c   :  { %706 = vmatpush.bf16.msrb.mxu2 %v1936_v1 }
 0x850   :  { %707 = vmatpush.bf16.msrb.mxu2 %v1952_v6 }
 0x854   :  { %708 = vmatpush.bf16.msrb.mxu2 %v1960_v8 }
 0x858   :  { %709 = vmatpush.bf16.msrb.mxu2 %v1966_v9 }
 0x85c   :  { %710 = vmatpush.bf16.msrb.mxu2 %v1970_v10 }
 0x860   :  { %711 = vmatpush.bf16.msrb.mxu2 %v1974_v11 }
 0x864   :  { %712 = vmatpush.bf16.msrb.mxu2 %v1978_v12 }
 0x8ca   :  { %v539_v33 = vpop.f32.mrf.mxu2 }
 0x8cb   :  { %v540_v34 = vadd.f32 %v2037_v19, %v539_v33 }
 0x8cd   :  { %v545_v37 = vadd.f32 %v544_v35, %v540_v34 }
 0x8cf   :  { %1610 = vtanh.f32 %v545_v37  ;;  %v641_v37 = vstv %s620_s11 }
 0x8d2   :  { %v541_v38 = vpop.f32.mrf.mxu2 }
 0x8d3   :  { %v542_v39 = vadd.f32 %v2037_v19, %v541_v38 }
 0x8d5   :  { %v546_v40 = vadd.f32 %v544_v35, %v542_v39  ;;  %v1611_v41 = vpop.eup %1610 }
 0x8d7   :  { %1612 = vtanh.f32 %v546_v40 }
 0x8dd   :  { %v1613_v42 = vpop.eup %1612 }
 0x8de   :  { %v549_v43 = vpack.c.bf16 %v1613_v42, %v1611_v41 }
 0x8e0   :  { %558 = vmatmul.bf16.vlgmr.msrb.gmra.mxu3 %v549_v43 }
 0x8e1   :  { %725 = vmatpush.bf16.msrb.mxu3 %v1944_v4 }
 0x8e5   :  { %726 = vmatpush.bf16.msrb.mxu3 %v1948_v5 }
 0x8e9   :  { %727 = vmatpush.bf16.msrb.mxu3 %v1956_v7 }
 0x8ed   :  { %728 = vmatpush.bf16.msrb.mxu3 %v2009_v14 }
 0x8f1   :  { %729 = vmatpush.bf16.msrb.mxu3 %v2013_v15 }
 0x8f5   :  { %730 = vmatpush.bf16.msrb.mxu3 %v2017_v16 }
 0x8f9   :  { %731 = vmatpush.bf16.msrb.mxu3 %v2021_v17 }
 0x8fd   :  { %732 = vmatpush.bf16.msrb.mxu3 %v2024_v18 }
 0x963   :  { %v559_v46 = vpop.f32.mrf.mxu3 }
 0x964   :  { %v560_v48 = vadd.f32 %v2069_v31, %v559_v46 }
 0x966   :  { %v571_v54 = vadd.f32 %v569_v50, %v560_v48  ;;  %v2357_v50 = vld [vmem:[#allocation7 + $0x38] sm:$0xff] }
 0x968   :  { %v574_v57 = vmul.f32 %v573_v51, %v571_v54 }
 0x96a   :  { %v2282_v58 = vadd.f32 %v574_v57, %v2159_v59 }
 0x96b   :  { %v561_v60 = vpop.f32.mrf.mxu3 }
 0x96c   :  { %579 = vst [vmem:[#allocation12 + $0x20] sm:$0xff] %v2282_v58  ;;  %v562_v49 = vadd.f32 %v2069_v31, %v561_v60 }
 0x96e   :  { %v572_v61 = vadd.f32 %v570_v52, %v562_v49 }
 0x970   :  { %v575_v53 = vmul.f32 %v573_v51, %v572_v61  ;;  %v2360_v51 = vld [vmem:[#allocation7 + $0x30] sm:$0xff] }
 0x972   :  { %v2288_v62 = vadd.f32 %v575_v53, %v2165_v63 }
 0x974   :  { %580 = vst [vmem:[#allocation12 + $0x28] sm:$0xff] %v2288_v62  ;;  %v585_v26 = vpack.c.bf16 %v2288_v62, %v2282_v58 }
 0x976   :  { %594 = vmatmul.bf16.vlgmr.msra.gmra.mxu0 %v585_v26  ;;  %v699_v26 = vstv %s2315_s9  ;;  %s1879_s9 = smov [#allocation12]  }
 0x977   :  { %761 = vmatpush.bf16.msra.mxu0 %v1933_v0  ;;  %s1460_s10 = sshll.u32 %s1879_s9, 4  ;;  %s1461_s10 = int_to_ptr.vmem [resolvable:$true] %s1460_s10 }
 0x97b   :  { %762 = vmatpush.bf16.msra.mxu0 %v1936_v1 }
 0x97f   :  { %763 = vmatpush.bf16.msra.mxu0 %v1952_v6 }
 0x983   :  { %764 = vmatpush.bf16.msra.mxu0 %v1960_v8 }
 0x987   :  { %765 = vmatpush.bf16.msra.mxu0 %v1966_v9 }
 0x98b   :  { %766 = vmatpush.bf16.msra.mxu0 %v1970_v10 }
 0x98f   :  { %767 = vmatpush.bf16.msra.mxu0 %v1974_v11 }
 0x993   :  { %768 = vmatpush.bf16.msra.mxu0 %v1978_v12 }
 0x9f3   :  { %v595_v59 = vpop.f32.mrf.mxu0 }
 0x9f4   :  { %v596_v63 = vadd.f32 %v2037_v19, %v595_v59 }
 0x9f6   :  { %v601_v30 = vadd.f32 %v596_v63, %v544_v35 }
 0x9f8   :  { %1614 = vtanh.f32 %v601_v30 }
 0x9fb   :  { %v597_v55 = vpop.f32.mrf.mxu0 }
 0x9fc   :  { %v598_v32 = vadd.f32 %v2037_v19, %v597_v55 }
 0x9fe   :  { %v602_v2 = vadd.f32 %v598_v32, %v544_v35  ;;  %v1615_v3 = vpop.eup %1614 }
 0xa00   :  { %1616 = vtanh.f32 %v602_v2  ;;  %v2395_v2 = vld [vmem:[#allocation7 + $0x20] sm:$0xff] }
 0xa06   :  { %v1617_v36 = vpop.eup %1616 }
 0xa07   :  { %v605_v13 = vpack.c.bf16 %v1617_v36, %v1615_v3  ;;  %v2398_v3 = vld [vmem:[#allocation7 + $0x18] sm:$0xff]  ;;  %v2401_v36 = vld [vmem:[#allocation7 + $0x10] sm:$0xff] }
 0xa09   :  { %614 = vmatmul.bf16.vlgmr.msra.gmra.mxu1 %v605_v13  ;;  %v2404_v13 = vld [vmem:[#allocation7 + $0x8] sm:$0xff] }
 0xa0a   :  { %781 = vmatpush.bf16.msra.mxu1 %v1944_v4 }
 0xa0e   :  { %782 = vmatpush.bf16.msra.mxu1 %v1948_v5 }
 0xa12   :  { %783 = vmatpush.bf16.msra.mxu1 %v1956_v7 }
 0xa16   :  { %784 = vmatpush.bf16.msra.mxu1 %v2009_v14 }
 0xa1a   :  { %785 = vmatpush.bf16.msra.mxu1 %v2013_v15 }
 0xa1e   :  { %786 = vmatpush.bf16.msra.mxu1 %v2017_v16 }
 0xa22   :  { %787 = vmatpush.bf16.msra.mxu1 %v2021_v17 }
 0xa26   :  { %788 = vmatpush.bf16.msra.mxu1 %v2024_v18 }
 0xa86   :  { %v615_v20 = vpop.f32.mrf.mxu1 }
 0xa87   :  { %v2319_v21 = vadd.f32 %v2069_v31, %v615_v20  ;;  %v2407_v20 = vld [vmem:[#allocation7] sm:$0xff] }
 0xa89   :  { %v622_v24 = vmul.f32 %v621_v22, %v2319_v21 }
 0xa8b   :  { %v624_v28 = vadd.f32 %v622_v24, %v2282_v58  ;;  %v719_v24 = vstv %s2311_s8 }
 0xa8e   :  { %v617_v23 = vpop.f32.mrf.mxu1 }
 0xa8f   :  { %v2323_v25 = vadd.f32 %v2069_v31, %v617_v23 }
 0xa91   :  { %v623_v27 = vmul.f32 %v621_v22, %v2323_v25 }
 0xa93   :  { %v625_v29 = vadd.f32 %v623_v27, %v2288_v62 }
 0xa95   :  { %v626_v33 = vpack.c.bf16 %v625_v29, %v624_v28 }
 0xa97   :  { %635 = vmatmul.bf16.vlgmr.msra.gmra.mxu2 %v626_v33 }
 0xa98   :  { %802 = vmatpush.bf16.msra.mxu2 %v1933_v0 }
 0xa9c   :  { %803 = vmatpush.bf16.msra.mxu2 %v1936_v1 }
 0xaa0   :  { %804 = vmatpush.bf16.msra.mxu2 %v1952_v6 }
 0xaa4   :  { %805 = vmatpush.bf16.msra.mxu2 %v1960_v8 }
 0xaa8   :  { %806 = vmatpush.bf16.msra.mxu2 %v1966_v9 }
 0xaac   :  { %807 = vmatpush.bf16.msra.mxu2 %v1970_v10 }
 0xab0   :  { %808 = vmatpush.bf16.msra.mxu2 %v1974_v11 }
 0xab4   :  { %809 = vmatpush.bf16.msra.mxu2 %v1978_v12 }
 0xb1a   :  { %v636_v34 = vpop.f32.mrf.mxu2 }
 0xb1b   :  { %v637_v35 = vadd.f32 %v2037_v19, %v636_v34 }
 0xb1d   :  { %v642_v0 = vadd.f32 %v641_v37, %v637_v35 }
 0xb1f   :  { %1618 = vtanh.f32 %v642_v0  ;;  %v2416_v0 = vld [vmem:[#allocation10 + $0x20] sm:$0xff] }
 0xb22   :  { %v638_v38 = vpop.f32.mrf.mxu2 }
 0xb23   :  { %v639_v1 = vadd.f32 %v2037_v19, %v638_v38  ;;  %v2419_v38 = vld [vmem:[#allocation10 + $0x18] sm:$0xff] }
 0xb25   :  { %v643_v39 = vadd.f32 %v641_v37, %v639_v1  ;;  %v1619_v40 = vpop.eup %1618 }
 0xb27   :  { %1620 = vtanh.f32 %v643_v39 }
 0xb2d   :  { %v1621_v41 = vpop.eup %1620 }
 0xb2e   :  { %v646_v42 = vpack.c.bf16 %v1621_v41, %v1619_v40 }
 0xb30   :  { %655 = vmatmul.bf16.vlgmr.msra.gmra.mxu3 %v646_v42 }
 0xb31   :  { %822 = vmatpush.bf16.msra.mxu3 %v1944_v4 }
 0xb35   :  { %823 = vmatpush.bf16.msra.mxu3 %v1948_v5 }
 0xb39   :  { %824 = vmatpush.bf16.msra.mxu3 %v1956_v7 }
 0xb3d   :  { %825 = vmatpush.bf16.msra.mxu3 %v2009_v14 }
 0xb41   :  { %826 = vmatpush.bf16.msra.mxu3 %v2013_v15 }
 0xb45   :  { %827 = vmatpush.bf16.msra.mxu3 %v2017_v16 }
 0xb49   :  { %828 = vmatpush.bf16.msra.mxu3 %v2021_v17 }
 0xb4d   :  { %829 = vmatpush.bf16.msra.mxu3 %v2024_v18 }
 0xbb3   :  { %v656_v43 = vpop.f32.mrf.mxu3 }
 0xbb4   :  { %v2348_v44 = vadd.f32 %v2069_v31, %v656_v43 }
 0xbb6   :  { %v661_v4 = vmul.f32 %v2348_v44, %v621_v22 }
 0xbb8   :  { %v663_v46 = vadd.f32 %v661_v4, %v2282_v58 }
 0xbbb   :  { %v658_v45 = vpop.f32.mrf.mxu3 }
 0xbbc   :  { %v2352_v5 = vadd.f32 %v2069_v31, %v658_v45  ;;  %v748_v45 = vstv %s739_s2 }
 0xbbe   :  { %v662_v7 = vmul.f32 %v2352_v5, %v621_v22 }
 0xbc0   :  { %v664_v47 = vadd.f32 %v662_v7, %v2288_v62 }
 0xbc2   :  { %v665_v48 = vpack.c.bf16 %v664_v47, %v663_v46 }
 0xbc4   :  { %674 = vmatmul.bf16.vlgmr.msrb.gmra.mxu0 %v665_v48 }
 0xbc5   :  { %841 = vmatpush.bf16.msrb.mxu0 %v2357_v50 }
 0xbc9   :  { %842 = vmatpush.bf16.msrb.mxu0 %v2360_v51 }
 0xbcd   :  { %843 = vmatpush.bf16.msrb.mxu0 %v1952_v6 }
 0xbd1   :  { %844 = vmatpush.bf16.msrb.mxu0 %v1960_v8 }
 0xbd5   :  { %845 = vmatpush.bf16.msrb.mxu0 %v1966_v9 }
 0xbd9   :  { %846 = vmatpush.bf16.msrb.mxu0 %v1970_v10  ;;  %v2371_v10 = vld [vmem:[#allocation10 + $0x38] sm:$0xff] }
 0xbdd   :  { %847 = vmatpush.bf16.msrb.mxu0 %v1974_v11  ;;  %v2374_v11 = vld [vmem:[#allocation10 + $0x30] sm:$0xff] }
 0xbe1   :  { %848 = vmatpush.bf16.msrb.mxu0 %v1978_v12  ;;  %v2377_v12 = vld [vmem:[#allocation10 + $0x28] sm:$0xff] }
 0xc41   :  { %v675_v54 = vpop.f32.mrf.mxu0 }
 0xc42   :  { %v676_v56 = vadd.f32 %v2037_v19, %v675_v54 }
 0xc44   :  { %v680_v57 = vadd.f32 %v676_v56, %v641_v37 }
 0xc46   :  { %1622 = vtanh.f32 %v680_v57 }
 0xc49   :  { %v677_v60 = vpop.f32.mrf.mxu0 }
 0xc4a   :  { %v678_v49 = vadd.f32 %v2037_v19, %v677_v60 }
 0xc4c   :  { %v681_v52 = vadd.f32 %v678_v49, %v641_v37  ;;  %v1623_v6 = vpop.eup %1622 }
 0xc4e   :  { %1624 = vtanh.f32 %v681_v52 }
 0xc54   :  { %v1625_v8 = vpop.eup %1624 }
 0xc55   :  { %v684_v9 = vpack.c.bf16 %v1625_v8, %v1623_v6  ;;  %v2462_v8 = vld [vmem:[#allocation10 + $0x8] sm:$0xff] }
 0xc57   :  { %693 = vmatmul.bf16.vlgmr.msrb.gmra.mxu1 %v684_v9  ;;  %v2465_v9 = vld [vmem:[#allocation10] sm:$0xff] }
 0xc58   :  { %860 = vmatpush.bf16.msrb.mxu1 %v2371_v10 }
 0xc5c   :  { %861 = vmatpush.bf16.msrb.mxu1 %v2374_v11 }
 0xc60   :  { %862 = vmatpush.bf16.msrb.mxu1 %v2377_v12 }
 0xc64   :  { %863 = vmatpush.bf16.msrb.mxu1 %v2009_v14 }
 0xc68   :  { %864 = vmatpush.bf16.msrb.mxu1 %v2013_v15 }
 0xc6c   :  { %865 = vmatpush.bf16.msrb.mxu1 %v2017_v16  ;;  %v2392_v16 = vld [vmem:[#allocation7 + $0x28] sm:$0xff] }
 0xc70   :  { %866 = vmatpush.bf16.msrb.mxu1 %v2021_v17 }
 0xc74   :  { %867 = vmatpush.bf16.msrb.mxu1 %v2024_v18 }
 0xcd4   :  { %v694_v61 = vpop.f32.mrf.mxu1 }
 0xcd5   :  { %v695_v53 = vadd.f32 %v2069_v31, %v694_v61 }
 0xcd7   :  { %v700_v63 = vmul.f32 %v699_v26, %v695_v53  ;;  %v740_v1 = vadd.f32 %v695_v53, %v2348_v44  ;;  %v2478_v53 = vld [vmem:[%s2850_s5] ss:$0 sm:$0xff] }
 0xcd9   :  { %v702_v32 = vadd.f32 %v700_v63, %v2282_v58  ;;  %v742_v39 = vmul.f32 2.0, %v740_v1 }
 0xcdb   :  { %v744_v43 = vadd.f32 %v742_v39, %v2319_v21 }
 0xcdc   :  { %v696_v59 = vpop.f32.mrf.mxu1 }
 0xcdd   :  { %v697_v30 = vadd.f32 %v2069_v31, %v696_v59  ;;  %v796_v59 = vstv %s759_s16 }
 0xcdf   :  { %v701_v55 = vmul.f32 %v699_v26, %v697_v30  ;;  %v741_v41 = vadd.f32 %v697_v30, %v2352_v5 }
 0xce1   :  { %v703_v14 = vadd.f32 %v701_v55, %v2288_v62  ;;  %v743_v7 = vmul.f32 2.0, %v741_v41 }
 0xce3   :  { %v704_v15 = vpack.c.bf16 %v703_v14, %v702_v32  ;;  %v745_v44 = vadd.f32 %v743_v7, %v2323_v25 }
 0xce5   :  { %713 = vmatmul.bf16.vlgmr.msrb.gmra.mxu2 %v704_v15 }
 0xce6   :  { %880 = vmatpush.bf16.msrb.mxu2 %v2357_v50 }
 0xcea   :  { %881 = vmatpush.bf16.msrb.mxu2 %v2360_v51 }
 0xcee   :  { %882 = vmatpush.bf16.msrb.mxu2 %v2392_v16 }
 0xcf2   :  { %883 = vmatpush.bf16.msrb.mxu2 %v2395_v2 }
 0xcf6   :  { %884 = vmatpush.bf16.msrb.mxu2 %v2398_v3 }
 0xcfa   :  { %885 = vmatpush.bf16.msrb.mxu2 %v2401_v36 }
 0xcfe   :  { %886 = vmatpush.bf16.msrb.mxu2 %v2404_v13 }
 0xd02   :  { %887 = vmatpush.bf16.msrb.mxu2 %v2407_v20 }
 0xd68   :  { %v714_v22 = vpop.f32.mrf.mxu2 }
 0xd69   :  { %v715_v23 = vadd.f32 %v2037_v19, %v714_v22 }
 0xd6b   :  { %v720_v27 = vadd.f32 %v719_v24, %v715_v23 }
 0xd6d   :  { %1626 = vtanh.f32 %v720_v27  ;;  %v816_v27 = vstv %s795_s18 }
 0xd70   :  { %v716_v28 = vpop.f32.mrf.mxu2 }
 0xd71   :  { %v717_v29 = vadd.f32 %v2037_v19, %v716_v28  ;;  %v2422_v19 = vld [vmem:[#allocation10 + $0x10] sm:$0xff] }
 0xd73   :  { %v721_v33 = vadd.f32 %v719_v24, %v717_v29  ;;  %v1627_v34 = vpop.eup %1626 }
 0xd75   :  { %1628 = vtanh.f32 %v721_v33 }
 0xd7b   :  { %v1629_v35 = vpop.eup %1628 }
 0xd7c   :  { %v724_v37 = vpack.c.bf16 %v1629_v35, %v1627_v34 }
 0xd7e   :  { %733 = vmatmul.bf16.vlgmr.msrb.gmra.mxu3 %v724_v37 }
 0xd7f   :  { %900 = vmatpush.bf16.msrb.mxu3 %v2371_v10 }
 0xd83   :  { %901 = vmatpush.bf16.msrb.mxu3 %v2374_v11 }
 0xd87   :  { %902 = vmatpush.bf16.msrb.mxu3 %v2377_v12 }
 0xd8b   :  { %903 = vmatpush.bf16.msrb.mxu3 %v2416_v0 }
 0xd8f   :  { %904 = vmatpush.bf16.msrb.mxu3 %v2419_v38 }
 0xd93   :  { %905 = vmatpush.bf16.msrb.mxu3 %v2422_v19 }
 0xd97   :  { %906 = vmatpush.bf16.msrb.mxu3 %v2021_v17 }
 0xd9b   :  { %907 = vmatpush.bf16.msrb.mxu3 %v2024_v18 }
 0xe01   :  { %v734_v40 = vpop.f32.mrf.mxu3 }
 0xe02   :  { %v735_v42 = vadd.f32 %v2069_v31, %v734_v40 }
 0xe04   :  { %v746_v4 = vadd.f32 %v744_v43, %v735_v42 }
 0xe06   :  { %v749_v46 = vmul.f32 %v748_v45, %v746_v4 }
 0xe08   :  { %v2433_v47 = vadd.f32 %v749_v46, %v2282_v58  ;;  %v2452_v58 = vld [vmem:[#allocation9] ss:$0 sm:$0xff] }
 0xe09   :  { %v736_v17 = vpop.f32.mrf.mxu3 }
 0xe0a   :  { %754 = vst [vmem:[#allocation12 + $0x30] sm:$0xff] %v2433_v47  ;;  %v737_v18 = vadd.f32 %v2069_v31, %v736_v17 }
 0xe0c   :  { %v747_v48 = vadd.f32 %v745_v44, %v737_v18 }
 0xe0e   :  { %v750_v5 = vmul.f32 %v748_v45, %v747_v48 }
 0xe10   :  { %v2439_v54 = vadd.f32 %v750_v5, %v2288_v62 }
 0xe12   :  { %755 = vst [vmem:[#allocation12 + $0x38] sm:$0xff] %v2439_v54  ;;  %v760_v21 = vpack.c.bf16 %v2439_v54, %v2433_v47 }
 0xe14   :  { %769 = vmatmul.bf16.vlgmr.msra.gmra.mxu0 %v760_v21 }
 0xe15   :  { %936 = vmatpush.bf16.msra.mxu0 %v2357_v50 }
 0xe19   :  { %937 = vmatpush.bf16.msra.mxu0 %v2360_v51 }
 0xe1d   :  { %938 = vmatpush.bf16.msra.mxu0 %v2392_v16 }
 0xe21   :  { %939 = vmatpush.bf16.msra.mxu0 %v2395_v2 }
 0xe25   :  { %940 = vmatpush.bf16.msra.mxu0 %v2398_v3 }
 0xe29   :  { %941 = vmatpush.bf16.msra.mxu0 %v2401_v36 }
 0xe2d   :  { %942 = vmatpush.bf16.msra.mxu0 %v2404_v13 }
 0xe31   :  { %943 = vmatpush.bf16.msra.mxu0 %v2407_v20 }
 0xe91   :  { %v770_v31 = vpop.f32.mrf.mxu0 }
 0xe92   :  { %v771_v62 = vadd.f32 %v2452_v58, %v770_v31 }
 0xe94   :  { %v776_v25 = vadd.f32 %v771_v62, %v719_v24 }
 0xe96   :  { %1630 = vtanh.f32 %v776_v25 }
 0xe99   :  { %v772_v56 = vpop.f32.mrf.mxu0 }
 0xe9a   :  { %v773_v57 = vadd.f32 %v2452_v58, %v772_v56 }
 0xe9c   :  { %v777_v60 = vadd.f32 %v773_v57, %v719_v24  ;;  %v1631_v49 = vpop.eup %1630 }
 0xe9e   :  { %1632 = vtanh.f32 %v777_v60  ;;  %v874_v60 = vstv %s2472_s15 }
 0xea4   :  { %v1633_v52 = vpop.eup %1632 }
 0xea5   :  { %v780_v6 = vpack.c.bf16 %v1633_v52, %v1631_v49 }
 0xea7   :  { %789 = vmatmul.bf16.vlgmr.msra.gmra.mxu1 %v780_v6 }
 0xea8   :  { %956 = vmatpush.bf16.msra.mxu1 %v2371_v10 }
 0xeac   :  { %957 = vmatpush.bf16.msra.mxu1 %v2374_v11 }
 0xeb0   :  { %958 = vmatpush.bf16.msra.mxu1 %v2377_v12 }
 0xeb4   :  { %959 = vmatpush.bf16.msra.mxu1 %v2416_v0 }
 0xeb8   :  { %960 = vmatpush.bf16.msra.mxu1 %v2419_v38 }
 0xebc   :  { %961 = vmatpush.bf16.msra.mxu1 %v2422_v19 }
 0xec0   :  { %962 = vmatpush.bf16.msra.mxu1 %v2462_v8 }
 0xec4   :  { %963 = vmatpush.bf16.msra.mxu1 %v2465_v9 }
 0xf24   :  { %v790_v61 = vpop.f32.mrf.mxu1 }
 0xf25   :  { %v2481_v26 = vadd.f32 %v2478_v53, %v790_v61 }
 0xf27   :  { %v797_v30 = vmul.f32 %v796_v59, %v2481_v26 }
 0xf29   :  { %v799_v14 = vadd.f32 %v797_v30, %v2433_v47 }
 0xf2c   :  { %v792_v63 = vpop.f32.mrf.mxu1 }
 0xf2d   :  { %v2485_v55 = vadd.f32 %v2478_v53, %v792_v63 }
 0xf2f   :  { %v798_v32 = vmul.f32 %v796_v59, %v2485_v55 }
 0xf31   :  { %v800_v15 = vadd.f32 %v798_v32, %v2439_v54 }
 0xf33   :  { %v801_v22 = vpack.c.bf16 %v800_v15, %v799_v14  ;;  %v894_v15 = vstv %s2468_s14  ;;  %s1462_s14 = sshll.u32 %s2851_s6, 4  ;;  %s1463_s14 = int_to_ptr.hbm [resolvable:$true] %s1462_s14 }
 0xf35   :  { %810 = vmatmul.bf16.vlgmr.msra.gmra.mxu2 %v801_v22 }
 0xf36   :  { %977 = vmatpush.bf16.msra.mxu2 %v2357_v50 }
 0xf3a   :  { %978 = vmatpush.bf16.msra.mxu2 %v2360_v51 }
 0xf3e   :  { %979 = vmatpush.bf16.msra.mxu2 %v2392_v16 }
 0xf42   :  { %980 = vmatpush.bf16.msra.mxu2 %v2395_v2 }
 0xf46   :  { %981 = vmatpush.bf16.msra.mxu2 %v2398_v3 }
 0xf4a   :  { %982 = vmatpush.bf16.msra.mxu2 %v2401_v36 }
 0xf4e   :  { %983 = vmatpush.bf16.msra.mxu2 %v2404_v13 }
 0xf52   :  { %984 = vmatpush.bf16.msra.mxu2 %v2407_v20 }
 0xfb8   :  { %v811_v23 = vpop.f32.mrf.mxu2 }
 0xfb9   :  { %v812_v24 = vadd.f32 %v2452_v58, %v811_v23 }
 0xfbb   :  { %v817_v28 = vadd.f32 %v816_v27, %v812_v24 }
 0xfbd   :  { %1634 = vtanh.f32 %v817_v28 }
 0xfc0   :  { %v813_v29 = vpop.f32.mrf.mxu2 }
 0xfc1   :  { %v814_v33 = vadd.f32 %v2452_v58, %v813_v29 }
 0xfc3   :  { %v818_v34 = vadd.f32 %v816_v27, %v814_v33  ;;  %v1635_v35 = vpop.eup %1634 }
 0xfc5   :  { %1636 = vtanh.f32 %v818_v34 }
 0xfcb   :  { %v1637_v37 = vpop.eup %1636 }
 0xfcc   :  { %v821_v1 = vpack.c.bf16 %v1637_v37, %v1635_v35 }
 0xfce   :  { %830 = vmatmul.bf16.vlgmr.msra.gmra.mxu3 %v821_v1 }
 0xfcf   :  { %997 = vmatpush.bf16.msra.mxu3 %v2371_v10 }
 0xfd3   :  { %998 = vmatpush.bf16.msra.mxu3 %v2374_v11 }
 0xfd7   :  { %999 = vmatpush.bf16.msra.mxu3 %v2377_v12 }
 0xfdb   :  { %1000 = vmatpush.bf16.msra.mxu3 %v2416_v0 }
 0xfdf   :  { %1001 = vmatpush.bf16.msra.mxu3 %v2419_v38 }
 0xfe3   :  { %1002 = vmatpush.bf16.msra.mxu3 %v2422_v19 }
 0xfe7   :  { %1003 = vmatpush.bf16.msra.mxu3 %v2462_v8 }
 0xfeb   :  { %1004 = vmatpush.bf16.msra.mxu3 %v2465_v9 }
0x1051   :  { %v831_v39 = vpop.f32.mrf.mxu3 }
0x1052   :  { %v2510_v40 = vadd.f32 %v2478_v53, %v831_v39 }
0x1054   :  { %v836_v42 = vmul.f32 %v2510_v40, %v796_v59 }
0x1056   :  { %v838_v4 = vadd.f32 %v836_v42, %v2433_v47  ;;  %v923_v42 = vstv %s914_s19 }
0x1059   :  { %v833_v41 = vpop.f32.mrf.mxu3 }
0x105a   :  { %v2514_v43 = vadd.f32 %v2478_v53, %v833_v41 }
0x105c   :  { %v837_v45 = vmul.f32 %v2514_v43, %v796_v59 }
0x105e   :  { %v839_v7 = vadd.f32 %v837_v45, %v2439_v54 }
0x1060   :  { %v840_v46 = vpack.c.bf16 %v839_v7, %v838_v4 }
0x1062   :  { %849 = vmatmul.bf16.vlgmr.msrb.gmra.mxu0 %v840_v46 }
0x1063   :  { %1016 = vmatpush.bf16.msrb.mxu0 %v2357_v50 }
0x1067   :  { %1017 = vmatpush.bf16.msrb.mxu0 %v2360_v51 }
0x106b   :  { %1018 = vmatpush.bf16.msrb.mxu0 %v2392_v16 }
0x106f   :  { %1019 = vmatpush.bf16.msrb.mxu0 %v2395_v2 }
0x1073   :  { %1020 = vmatpush.bf16.msrb.mxu0 %v2398_v3 }
0x1077   :  { %1021 = vmatpush.bf16.msrb.mxu0 %v2401_v36 }
0x107b   :  { %1022 = vmatpush.bf16.msrb.mxu0 %v2404_v13 }
0x107f   :  { %1023 = vmatpush.bf16.msrb.mxu0 %v2407_v20 }
0x10df   :  { %v850_v17 = vpop.f32.mrf.mxu0 }
0x10e0   :  { %v851_v18 = vadd.f32 %v2452_v58, %v850_v17 }
0x10e2   :  { %v855_v44 = vadd.f32 %v851_v18, %v816_v27 }
0x10e4   :  { %1638 = vtanh.f32 %v855_v44 }
0x10e7   :  { %v852_v48 = vpop.f32.mrf.mxu0 }
0x10e8   :  { %v853_v5 = vadd.f32 %v2452_v58, %v852_v48 }
0x10ea   :  { %v856_v21 = vadd.f32 %v853_v5, %v816_v27  ;;  %v1639_v31 = vpop.eup %1638 }
0x10ec   :  { %1640 = vtanh.f32 %v856_v21 }
0x10f2   :  { %v1641_v62 = vpop.eup %1640 }
0x10f3   :  { %v859_v25 = vpack.c.bf16 %v1641_v62, %v1639_v31 }
0x10f5   :  { %868 = vmatmul.bf16.vlgmr.msrb.gmra.mxu1 %v859_v25 }
0x10f6   :  { %1035 = vmatpush.bf16.msrb.mxu1 %v2371_v10 }
0x10fa   :  { %1036 = vmatpush.bf16.msrb.mxu1 %v2374_v11 }
0x10fe   :  { %1037 = vmatpush.bf16.msrb.mxu1 %v2377_v12 }
0x1102   :  { %1038 = vmatpush.bf16.msrb.mxu1 %v2416_v0 }
0x1106   :  { %1039 = vmatpush.bf16.msrb.mxu1 %v2419_v38 }
0x110a   :  { %1040 = vmatpush.bf16.msrb.mxu1 %v2422_v19 }
0x110e   :  { %1041 = vmatpush.bf16.msrb.mxu1 %v2462_v8 }
0x1112   :  { %1042 = vmatpush.bf16.msrb.mxu1 %v2465_v9 }
0x1172   :  { %v869_v56 = vpop.f32.mrf.mxu1 }
0x1173   :  { %v870_v57 = vadd.f32 %v2478_v53, %v869_v56 }
0x1175   :  { %v875_v52 = vmul.f32 %v874_v60, %v870_v57  ;;  %v915_v34 = vadd.f32 %v870_v57, %v2510_v40 }
0x1177   :  { %v877_v59 = vadd.f32 %v875_v52, %v2433_v47  ;;  %v917_v35 = vmul.f32 2.0, %v915_v34 }
0x1179   :  { %v919_v41 = vadd.f32 %v917_v35, %v2481_v26 }
0x117a   :  { %v871_v49 = vpop.f32.mrf.mxu1 }
0x117b   :  { %v872_v6 = vadd.f32 %v2478_v53, %v871_v49  ;;  %v971_v49 = vstv %s934_s3 }
0x117d   :  { %v876_v61 = vmul.f32 %v874_v60, %v872_v6  ;;  %v916_v1 = vadd.f32 %v872_v6, %v2514_v43 }
0x117f   :  { %v878_v63 = vadd.f32 %v876_v61, %v2439_v54  ;;  %v918_v4 = vmul.f32 2.0, %v916_v1 }
0x1181   :  { %v879_v30 = vpack.c.bf16 %v878_v63, %v877_v59  ;;  %v920_v18 = vadd.f32 %v918_v4, %v2485_v55 }
0x1183   :  { %888 = vmatmul.bf16.vlgmr.msrb.gmra.mxu2 %v879_v30 }
0x1184   :  { %1055 = vmatpush.bf16.msrb.mxu2 %v2357_v50 }
0x1188   :  { %1056 = vmatpush.bf16.msrb.mxu2 %v2360_v51 }
0x118c   :  { %1057 = vmatpush.bf16.msrb.mxu2 %v2392_v16 }
0x1190   :  { %1058 = vmatpush.bf16.msrb.mxu2 %v2395_v2 }
0x1194   :  { %1059 = vmatpush.bf16.msrb.mxu2 %v2398_v3 }
0x1198   :  { %1060 = vmatpush.bf16.msrb.mxu2 %v2401_v36 }
0x119c   :  { %1061 = vmatpush.bf16.msrb.mxu2 %v2404_v13 }
0x11a0   :  { %1062 = vmatpush.bf16.msrb.mxu2 %v2407_v20 }
0x1206   :  { %v889_v32 = vpop.f32.mrf.mxu2 }
0x1207   :  { %v890_v14 = vadd.f32 %v2452_v58, %v889_v32 }
0x1209   :  { %v895_v22 = vadd.f32 %v894_v15, %v890_v14 }
0x120b   :  { %1642 = vtanh.f32 %v895_v22  ;;  %v991_v22 = vstv %s970_s4 }
0x120e   :  { %v891_v23 = vpop.f32.mrf.mxu2 }
0x120f   :  { %v892_v24 = vadd.f32 %v2452_v58, %v891_v23 }
0x1211   :  { %v896_v27 = vadd.f32 %v894_v15, %v892_v24  ;;  %v1643_v28 = vpop.eup %1642 }
0x1213   :  { %1644 = vtanh.f32 %v896_v27 }
0x1219   :  { %v1645_v29 = vpop.eup %1644 }
0x121a   :  { %v899_v33 = vpack.c.bf16 %v1645_v29, %v1643_v28 }
0x121c   :  { %908 = vmatmul.bf16.vlgmr.msrb.gmra.mxu3 %v899_v33 }
0x121d   :  { %1075 = vmatpush.bf16.msrb.mxu3 %v2371_v10 }
0x1221   :  { %1076 = vmatpush.bf16.msrb.mxu3 %v2374_v11 }
0x1225   :  { %1077 = vmatpush.bf16.msrb.mxu3 %v2377_v12 }
0x1229   :  { %1078 = vmatpush.bf16.msrb.mxu3 %v2416_v0 }
0x122d   :  { %1079 = vmatpush.bf16.msrb.mxu3 %v2419_v38 }
0x1231   :  { %1080 = vmatpush.bf16.msrb.mxu3 %v2422_v19 }
0x1235   :  { %1081 = vmatpush.bf16.msrb.mxu3 %v2462_v8 }
0x1239   :  { %1082 = vmatpush.bf16.msrb.mxu3 %v2465_v9 }
0x129f   :  { %v909_v37 = vpop.f32.mrf.mxu3 }
0x12a0   :  { %v910_v39 = vadd.f32 %v2478_v53, %v909_v37 }
0x12a2   :  { %v921_v45 = vadd.f32 %v919_v41, %v910_v39 }
0x12a4   :  { %v924_v7 = vmul.f32 %v923_v42, %v921_v45 }
0x12a6   :  { %v2567_v46 = vadd.f32 %v924_v7, %v2433_v47 }
0x12a7   :  { %v911_v17 = vpop.f32.mrf.mxu3 }
0x12a8   :  { %929 = vst [vmem:[#allocation12 + $0x40] sm:$0xff] %v2567_v46  ;;  %v912_v40 = vadd.f32 %v2478_v53, %v911_v17 }
0x12aa   :  { %v922_v44 = vadd.f32 %v920_v18, %v912_v40 }
0x12ac   :  { %v925_v43 = vmul.f32 %v923_v42, %v922_v44 }
0x12ae   :  { %v2573_v48 = vadd.f32 %v925_v43, %v2439_v54 }
0x12b0   :  { %930 = vst [vmem:[#allocation12 + $0x48] sm:$0xff] %v2573_v48  ;;  %v935_v26 = vpack.c.bf16 %v2573_v48, %v2567_v46 }
0x12b2   :  { %944 = vmatmul.bf16.vlgmr.msra.gmra.mxu0 %v935_v26 }
0x12b3   :  { %1111 = vmatpush.bf16.msra.mxu0 %v2357_v50 }
0x12b7   :  { %1112 = vmatpush.bf16.msra.mxu0 %v2360_v51 }
0x12bb   :  { %1113 = vmatpush.bf16.msra.mxu0 %v2392_v16 }
0x12bf   :  { %1114 = vmatpush.bf16.msra.mxu0 %v2395_v2 }
0x12c3   :  { %1115 = vmatpush.bf16.msra.mxu0 %v2398_v3 }
0x12c7   :  { %1116 = vmatpush.bf16.msra.mxu0 %v2401_v36 }
0x12cb   :  { %1117 = vmatpush.bf16.msra.mxu0 %v2404_v13 }
0x12cf   :  { %1118 = vmatpush.bf16.msra.mxu0 %v2407_v20 }
0x132f   :  { %v945_v47 = vpop.f32.mrf.mxu0 }
0x1330   :  { %v946_v54 = vadd.f32 %v2452_v58, %v945_v47 }
0x1332   :  { %v951_v55 = vadd.f32 %v946_v54, %v894_v15 }
0x1334   :  { %1646 = vtanh.f32 %v951_v55 }
0x1337   :  { %v947_v5 = vpop.f32.mrf.mxu0 }
0x1338   :  { %v948_v21 = vadd.f32 %v2452_v58, %v947_v5 }
0x133a   :  { %v952_v31 = vadd.f32 %v948_v21, %v894_v15  ;;  %v1647_v62 = vpop.eup %1646 }
0x133c   :  { %1648 = vtanh.f32 %v952_v31  ;;  %v1049_v31 = vstv %s2600_s21 }
0x1342   :  { %v1649_v25 = vpop.eup %1648 }
0x1343   :  { %v955_v56 = vpack.c.bf16 %v1649_v25, %v1647_v62 }
0x1345   :  { %964 = vmatmul.bf16.vlgmr.msra.gmra.mxu1 %v955_v56 }
0x1346   :  { %1131 = vmatpush.bf16.msra.mxu1 %v2371_v10 }
0x134a   :  { %1132 = vmatpush.bf16.msra.mxu1 %v2374_v11 }
0x134e   :  { %1133 = vmatpush.bf16.msra.mxu1 %v2377_v12 }
0x1352   :  { %1134 = vmatpush.bf16.msra.mxu1 %v2416_v0 }
0x1356   :  { %1135 = vmatpush.bf16.msra.mxu1 %v2419_v38 }
0x135a   :  { %1136 = vmatpush.bf16.msra.mxu1 %v2422_v19 }
0x135e   :  { %1137 = vmatpush.bf16.msra.mxu1 %v2462_v8 }
0x1362   :  { %1138 = vmatpush.bf16.msra.mxu1 %v2465_v9 }
0x13c2   :  { %v965_v57 = vpop.f32.mrf.mxu1 }
0x13c3   :  { %v2604_v60 = vadd.f32 %v2478_v53, %v965_v57 }
0x13c5   :  { %v972_v6 = vmul.f32 %v971_v49, %v2604_v60 }
0x13c7   :  { %v974_v63 = vadd.f32 %v972_v6, %v2567_v46 }
0x13ca   :  { %v967_v52 = vpop.f32.mrf.mxu1 }
0x13cb   :  { %v2608_v61 = vadd.f32 %v2478_v53, %v967_v52 }
0x13cd   :  { %v973_v59 = vmul.f32 %v971_v49, %v2608_v61 }
0x13cf   :  { %v975_v30 = vadd.f32 %v973_v59, %v2573_v48 }
0x13d1   :  { %v976_v32 = vpack.c.bf16 %v975_v30, %v974_v63  ;;  %v1069_v30 = vstv %s2596_s20 }
0x13d3   :  { %985 = vmatmul.bf16.vlgmr.msra.gmra.mxu2 %v976_v32 }
0x13d4   :  { %1152 = vmatpush.bf16.msra.mxu2 %v2357_v50 }
0x13d8   :  { %1153 = vmatpush.bf16.msra.mxu2 %v2360_v51 }
0x13dc   :  { %1154 = vmatpush.bf16.msra.mxu2 %v2392_v16 }
0x13e0   :  { %1155 = vmatpush.bf16.msra.mxu2 %v2395_v2 }
0x13e4   :  { %1156 = vmatpush.bf16.msra.mxu2 %v2398_v3 }
0x13e8   :  { %1157 = vmatpush.bf16.msra.mxu2 %v2401_v36 }
0x13ec   :  { %1158 = vmatpush.bf16.msra.mxu2 %v2404_v13 }
0x13f0   :  { %1159 = vmatpush.bf16.msra.mxu2 %v2407_v20 }
0x1456   :  { %v986_v14 = vpop.f32.mrf.mxu2 }
0x1457   :  { %v987_v15 = vadd.f32 %v2452_v58, %v986_v14 }
0x1459   :  { %v992_v23 = vadd.f32 %v991_v22, %v987_v15 }
0x145b   :  { %1650 = vtanh.f32 %v992_v23 }
0x145e   :  { %v988_v24 = vpop.f32.mrf.mxu2 }
0x145f   :  { %v989_v27 = vadd.f32 %v2452_v58, %v988_v24 }
0x1461   :  { %v993_v28 = vadd.f32 %v991_v22, %v989_v27  ;;  %v1651_v29 = vpop.eup %1650 }
0x1463   :  { %1652 = vtanh.f32 %v993_v28 }
0x1469   :  { %v1653_v33 = vpop.eup %1652 }
0x146a   :  { %v996_v34 = vpack.c.bf16 %v1653_v33, %v1651_v29 }
0x146c   :  { %1005 = vmatmul.bf16.vlgmr.msra.gmra.mxu3 %v996_v34 }
0x146d   :  { %1172 = vmatpush.bf16.msra.mxu3 %v2371_v10 }
0x1471   :  { %1173 = vmatpush.bf16.msra.mxu3 %v2374_v11 }
0x1475   :  { %1174 = vmatpush.bf16.msra.mxu3 %v2377_v12 }
0x1479   :  { %1175 = vmatpush.bf16.msra.mxu3 %v2416_v0 }
0x147d   :  { %1176 = vmatpush.bf16.msra.mxu3 %v2419_v38 }
0x1481   :  { %1177 = vmatpush.bf16.msra.mxu3 %v2422_v19 }
0x1485   :  { %1178 = vmatpush.bf16.msra.mxu3 %v2462_v8 }
0x1489   :  { %1179 = vmatpush.bf16.msra.mxu3 %v2465_v9 }
0x14ef   :  { %v1006_v35 = vpop.f32.mrf.mxu3 }
0x14f0   :  { %v2633_v37 = vadd.f32 %v2478_v53, %v1006_v35 }
0x14f2   :  { %v1011_v39 = vmul.f32 %v2633_v37, %v971_v49 }
0x14f4   :  { %v1013_v45 = vadd.f32 %v1011_v39, %v2567_v46  ;;  %v1098_v39 = vstv %s1089_s22 }
0x14f7   :  { %v1008_v1 = vpop.f32.mrf.mxu3 }
0x14f8   :  { %v2637_v41 = vadd.f32 %v2478_v53, %v1008_v1 }
0x14fa   :  { %v1012_v42 = vmul.f32 %v2637_v41, %v971_v49 }
0x14fc   :  { %v1014_v4 = vadd.f32 %v1012_v42, %v2573_v48 }
0x14fe   :  { %v1015_v7 = vpack.c.bf16 %v1014_v4, %v1013_v45 }
0x1500   :  { %1024 = vmatmul.bf16.vlgmr.msrb.gmra.mxu0 %v1015_v7 }
0x1501   :  { %1191 = vmatpush.bf16.msrb.mxu0 %v2357_v50 }
0x1505   :  { %1192 = vmatpush.bf16.msrb.mxu0 %v2360_v51 }
0x1509   :  { %1193 = vmatpush.bf16.msrb.mxu0 %v2392_v16 }
0x150d   :  { %1194 = vmatpush.bf16.msrb.mxu0 %v2395_v2 }
0x1511   :  { %1195 = vmatpush.bf16.msrb.mxu0 %v2398_v3 }
0x1515   :  { %1196 = vmatpush.bf16.msrb.mxu0 %v2401_v36 }
0x1519   :  { %1197 = vmatpush.bf16.msrb.mxu0 %v2404_v13 }
0x151d   :  { %1198 = vmatpush.bf16.msrb.mxu0 %v2407_v20 }
0x157d   :  { %v1025_v17 = vpop.f32.mrf.mxu0 }
0x157e   :  { %v1026_v40 = vadd.f32 %v2452_v58, %v1025_v17 }
0x1580   :  { %v1030_v18 = vadd.f32 %v1026_v40, %v991_v22 }
0x1582   :  { %1654 = vtanh.f32 %v1030_v18 }
0x1585   :  { %v1027_v44 = vpop.f32.mrf.mxu0 }
0x1586   :  { %v1028_v43 = vadd.f32 %v2452_v58, %v1027_v44 }
0x1588   :  { %v1031_v26 = vadd.f32 %v1028_v43, %v991_v22  ;;  %v1655_v47 = vpop.eup %1654 }
0x158a   :  { %1656 = vtanh.f32 %v1031_v26 }
0x1590   :  { %v1657_v54 = vpop.eup %1656 }
0x1591   :  { %v1034_v55 = vpack.c.bf16 %v1657_v54, %v1655_v47 }
0x1593   :  { %1043 = vmatmul.bf16.vlgmr.msrb.gmra.mxu1 %v1034_v55 }
0x1594   :  { %1210 = vmatpush.bf16.msrb.mxu1 %v2371_v10 }
0x1598   :  { %1211 = vmatpush.bf16.msrb.mxu1 %v2374_v11 }
0x159c   :  { %1212 = vmatpush.bf16.msrb.mxu1 %v2377_v12 }
0x15a0   :  { %1213 = vmatpush.bf16.msrb.mxu1 %v2416_v0 }
0x15a4   :  { %1214 = vmatpush.bf16.msrb.mxu1 %v2419_v38 }
0x15a8   :  { %1215 = vmatpush.bf16.msrb.mxu1 %v2422_v19 }
0x15ac   :  { %1216 = vmatpush.bf16.msrb.mxu1 %v2462_v8 }
0x15b0   :  { %1217 = vmatpush.bf16.msrb.mxu1 %v2465_v9 }
0x1610   :  { %v1044_v5 = vpop.f32.mrf.mxu1 }
0x1611   :  { %v1045_v21 = vadd.f32 %v2478_v53, %v1044_v5 }
0x1613   :  { %v1050_v25 = vmul.f32 %v1049_v31, %v1045_v21  ;;  %v1090_v28 = vadd.f32 %v1045_v21, %v2633_v37 }
0x1615   :  { %v1052_v49 = vadd.f32 %v1050_v25, %v2567_v46  ;;  %v1092_v29 = vmul.f32 2.0, %v1090_v28 }
0x1617   :  { %v1094_v1 = vadd.f32 %v1092_v29, %v2604_v60 }
0x1618   :  { %v1046_v62 = vpop.f32.mrf.mxu1 }
0x1619   :  { %v1047_v56 = vadd.f32 %v2478_v53, %v1046_v62  ;;  %v1146_v62 = vstv %s1109_s25 }
0x161b   :  { %v1051_v57 = vmul.f32 %v1049_v31, %v1047_v56  ;;  %v1091_v34 = vadd.f32 %v1047_v56, %v2637_v41 }
0x161d   :  { %v1053_v52 = vadd.f32 %v1051_v57, %v2573_v48  ;;  %v1093_v45 = vmul.f32 2.0, %v1091_v34 }
0x161f   :  { %v1054_v6 = vpack.c.bf16 %v1053_v52, %v1052_v49  ;;  %v1095_v40 = vadd.f32 %v1093_v45, %v2608_v61 }
0x1621   :  { %1063 = vmatmul.bf16.vlgmr.msrb.gmra.mxu2 %v1054_v6 }
0x1622   :  { %1230 = vmatpush.bf16.msrb.mxu2 %v2357_v50 }
0x1626   :  { %1231 = vmatpush.bf16.msrb.mxu2 %v2360_v51 }
0x162a   :  { %1232 = vmatpush.bf16.msrb.mxu2 %v2392_v16 }
0x162e   :  { %1233 = vmatpush.bf16.msrb.mxu2 %v2395_v2 }
0x1632   :  { %1234 = vmatpush.bf16.msrb.mxu2 %v2398_v3 }
0x1636   :  { %1235 = vmatpush.bf16.msrb.mxu2 %v2401_v36 }
0x163a   :  { %1236 = vmatpush.bf16.msrb.mxu2 %v2404_v13 }
0x163e   :  { %1237 = vmatpush.bf16.msrb.mxu2 %v2407_v20 }
0x16a4   :  { %v1064_v59 = vpop.f32.mrf.mxu2 }
0x16a5   :  { %v1065_v63 = vadd.f32 %v2452_v58, %v1064_v59 }
0x16a7   :  { %v1070_v32 = vadd.f32 %v1069_v30, %v1065_v63 }
0x16a9   :  { %1658 = vtanh.f32 %v1070_v32  ;;  %v1166_v32 = vstv %s1145_s26 }
0x16ac   :  { %v1066_v14 = vpop.f32.mrf.mxu2 }
0x16ad   :  { %v1067_v15 = vadd.f32 %v2452_v58, %v1066_v14 }
0x16af   :  { %v1071_v22 = vadd.f32 %v1069_v30, %v1067_v15  ;;  %v1659_v23 = vpop.eup %1658 }
0x16b1   :  { %1660 = vtanh.f32 %v1071_v22 }
0x16b7   :  { %v1661_v24 = vpop.eup %1660 }
0x16b8   :  { %v1074_v27 = vpack.c.bf16 %v1661_v24, %v1659_v23 }
0x16ba   :  { %1083 = vmatmul.bf16.vlgmr.msrb.gmra.mxu3 %v1074_v27 }
0x16bb   :  { %1250 = vmatpush.bf16.msrb.mxu3 %v2371_v10 }
0x16bf   :  { %1251 = vmatpush.bf16.msrb.mxu3 %v2374_v11 }
0x16c3   :  { %1252 = vmatpush.bf16.msrb.mxu3 %v2377_v12 }
0x16c7   :  { %1253 = vmatpush.bf16.msrb.mxu3 %v2416_v0 }
0x16cb   :  { %1254 = vmatpush.bf16.msrb.mxu3 %v2419_v38 }
0x16cf   :  { %1255 = vmatpush.bf16.msrb.mxu3 %v2422_v19 }
0x16d3   :  { %1256 = vmatpush.bf16.msrb.mxu3 %v2462_v8 }
0x16d7   :  { %1257 = vmatpush.bf16.msrb.mxu3 %v2465_v9 }
0x173d   :  { %v1084_v33 = vpop.f32.mrf.mxu3 }
0x173e   :  { %v1085_v35 = vadd.f32 %v2478_v53, %v1084_v33 }
0x1740   :  { %v1096_v42 = vadd.f32 %v1094_v1, %v1085_v35  ;;  %v1712_v1 = vld [vmem:[#allocation7 + $0x38] sm:$0xff] }
0x1742   :  { %v1099_v4 = vmul.f32 %v1098_v39, %v1096_v42 }
0x1744   :  { %v2690_v7 = vadd.f32 %v1099_v4, %v2567_v46 }
0x1745   :  { %v1086_v17 = vpop.f32.mrf.mxu3 }
0x1746   :  { %1104 = vst [vmem:[#allocation12 + $0x50] sm:$0xff] %v2690_v7  ;;  %v1087_v37 = vadd.f32 %v2478_v53, %v1086_v17 }
0x1748   :  { %v1097_v18 = vadd.f32 %v1095_v40, %v1087_v37 }
0x174a   :  { %v1100_v41 = vmul.f32 %v1098_v39, %v1097_v18  ;;  %v1713_v39 = vld [vmem:[#allocation7 + $0x30] sm:$0xff] }
0x174c   :  { %v2696_v44 = vadd.f32 %v1100_v41, %v2573_v48 }
0x174e   :  { %1105 = vst [vmem:[#allocation12 + $0x58] sm:$0xff] %v2696_v44  ;;  %v1110_v60 = vpack.c.bf16 %v2696_v44, %v2690_v7 }
0x1750   :  { %1119 = vmatmul.bf16.vlgmr.msra.gmra.mxu0 %v1110_v60  ;;  %v1224_v60 = vstv %s2723_s24 }
0x1751   :  { %1286 = vmatpush.bf16.msra.mxu0 %v2357_v50 }
0x1755   :  { %1287 = vmatpush.bf16.msra.mxu0 %v2360_v51 }
0x1759   :  { %1288 = vmatpush.bf16.msra.mxu0 %v2392_v16 }
0x175d   :  { %1289 = vmatpush.bf16.msra.mxu0 %v2395_v2 }
0x1761   :  { %1290 = vmatpush.bf16.msra.mxu0 %v2398_v3 }
0x1765   :  { %1291 = vmatpush.bf16.msra.mxu0 %v2401_v36 }
0x1769   :  { %1292 = vmatpush.bf16.msra.mxu0 %v2404_v13 }
0x176d   :  { %1293 = vmatpush.bf16.msra.mxu0 %v2407_v20 }
0x17cd   :  { %v1120_v46 = vpop.f32.mrf.mxu0 }
0x17ce   :  { %v1121_v48 = vadd.f32 %v2452_v58, %v1120_v46 }
0x17d0   :  { %v1126_v61 = vadd.f32 %v1121_v48, %v1069_v30 }
0x17d2   :  { %1662 = vtanh.f32 %v1126_v61 }
0x17d5   :  { %v1122_v43 = vpop.f32.mrf.mxu0 }
0x17d6   :  { %v1123_v26 = vadd.f32 %v2452_v58, %v1122_v43 }
0x17d8   :  { %v1127_v47 = vadd.f32 %v1123_v26, %v1069_v30  ;;  %v1663_v54 = vpop.eup %1662 }
0x17da   :  { %1664 = vtanh.f32 %v1127_v47  ;;  %v1718_v47 = vld [vmem:[#allocation7 + $0x20] sm:$0xff] }
0x17e0   :  { %v1665_v55 = vpop.eup %1664 }
0x17e1   :  { %v1130_v5 = vpack.c.bf16 %v1665_v55, %v1663_v54  ;;  %v1719_v54 = vld [vmem:[#allocation7 + $0x18] sm:$0xff]  ;;  %v1720_v55 = vld [vmem:[#allocation7 + $0x10] sm:$0xff] }
0x17e3   :  { %1139 = vmatmul.bf16.vlgmr.msra.gmra.mxu1 %v1130_v5  ;;  %v1721_v5 = vld [vmem:[#allocation7 + $0x8] sm:$0xff] }
0x17e4   :  { %1306 = vmatpush.bf16.msra.mxu1 %v2371_v10 }
0x17e8   :  { %1307 = vmatpush.bf16.msra.mxu1 %v2374_v11 }
0x17ec   :  { %1308 = vmatpush.bf16.msra.mxu1 %v2377_v12 }
0x17f0   :  { %1309 = vmatpush.bf16.msra.mxu1 %v2416_v0 }
0x17f4   :  { %1310 = vmatpush.bf16.msra.mxu1 %v2419_v38 }
0x17f8   :  { %1311 = vmatpush.bf16.msra.mxu1 %v2422_v19 }
0x17fc   :  { %1312 = vmatpush.bf16.msra.mxu1 %v2462_v8 }
0x1800   :  { %1313 = vmatpush.bf16.msra.mxu1 %v2465_v9 }
0x1860   :  { %v1140_v21 = vpop.f32.mrf.mxu1 }
0x1861   :  { %v2727_v31 = vadd.f32 %v2478_v53, %v1140_v21  ;;  %v1722_v21 = vld [vmem:[#allocation7] sm:$0xff] }
0x1863   :  { %v1147_v56 = vmul.f32 %v1146_v62, %v2727_v31 }
0x1865   :  { %v1149_v52 = vadd.f32 %v1147_v56, %v2690_v7  ;;  %v1244_v56 = vstv %s2719_s23 }
0x1868   :  { %v1142_v25 = vpop.f32.mrf.mxu1 }
0x1869   :  { %v2731_v57 = vadd.f32 %v2478_v53, %v1142_v25 }
0x186b   :  { %v1148_v49 = vmul.f32 %v1146_v62, %v2731_v57 }
0x186d   :  { %v1150_v6 = vadd.f32 %v1148_v49, %v2696_v44 }
0x186f   :  { %v1151_v59 = vpack.c.bf16 %v1150_v6, %v1149_v52 }
0x1871   :  { %1160 = vmatmul.bf16.vlgmr.msra.gmra.mxu2 %v1151_v59 }
0x1872   :  { %1327 = vmatpush.bf16.msra.mxu2 %v2357_v50 }
0x1876   :  { %1328 = vmatpush.bf16.msra.mxu2 %v2360_v51 }
0x187a   :  { %1329 = vmatpush.bf16.msra.mxu2 %v2392_v16 }
0x187e   :  { %1330 = vmatpush.bf16.msra.mxu2 %v2395_v2 }
0x1882   :  { %1331 = vmatpush.bf16.msra.mxu2 %v2398_v3 }
0x1886   :  { %1332 = vmatpush.bf16.msra.mxu2 %v2401_v36 }
0x188a   :  { %1333 = vmatpush.bf16.msra.mxu2 %v2404_v13 }
0x188e   :  { %1334 = vmatpush.bf16.msra.mxu2 %v2407_v20 }
0x18f4   :  { %v1161_v63 = vpop.f32.mrf.mxu2 }
0x18f5   :  { %v1162_v30 = vadd.f32 %v2452_v58, %v1161_v63 }
0x18f7   :  { %v1167_v50 = vadd.f32 %v1166_v32, %v1162_v30 }
0x18f9   :  { %1666 = vtanh.f32 %v1167_v50  ;;  %v1723_v50 = vld [vmem:[#allocation10 + $0x20] sm:$0xff] }
0x18fc   :  { %v1163_v14 = vpop.f32.mrf.mxu2 }
0x18fd   :  { %v1164_v51 = vadd.f32 %v2452_v58, %v1163_v14  ;;  %v1724_v14 = vld [vmem:[#allocation10 + $0x18] sm:$0xff] }
0x18ff   :  { %v1168_v15 = vadd.f32 %v1166_v32, %v1164_v51  ;;  %v1667_v22 = vpop.eup %1666  ;;  %v1725_v51 = vld [vmem:[#allocation10 + $0x10] sm:$0xff] }
0x1901   :  { %1668 = vtanh.f32 %v1168_v15 }
0x1907   :  { %v1669_v23 = vpop.eup %1668 }
0x1908   :  { %v1171_v24 = vpack.c.bf16 %v1669_v23, %v1667_v22 }
0x190a   :  { %1180 = vmatmul.bf16.vlgmr.msra.gmra.mxu3 %v1171_v24 }
0x190b   :  { %1347 = vmatpush.bf16.msra.mxu3 %v2371_v10 }
0x190f   :  { %1348 = vmatpush.bf16.msra.mxu3 %v2374_v11 }
0x1913   :  { %1349 = vmatpush.bf16.msra.mxu3 %v2377_v12 }
0x1917   :  { %1350 = vmatpush.bf16.msra.mxu3 %v2416_v0 }
0x191b   :  { %1351 = vmatpush.bf16.msra.mxu3 %v2419_v38 }
0x191f   :  { %1352 = vmatpush.bf16.msra.mxu3 %v2422_v19 }
0x1923   :  { %1353 = vmatpush.bf16.msra.mxu3 %v2462_v8 }
0x1927   :  { %1354 = vmatpush.bf16.msra.mxu3 %v2465_v9 }
0x198d   :  { %v1181_v27 = vpop.f32.mrf.mxu3 }
0x198e   :  { %v2756_v28 = vadd.f32 %v2478_v53, %v1181_v27 }
0x1990   :  { %v1186_v10 = vmul.f32 %v2756_v28, %v1146_v62 }
0x1992   :  { %v1188_v33 = vadd.f32 %v1186_v10, %v2690_v7  ;;  %v1273_v10 = vstv %s1264_s27 }
0x1995   :  { %v1183_v29 = vpop.f32.mrf.mxu3 }
0x1996   :  { %v2760_v11 = vadd.f32 %v2478_v53, %v1183_v29 }
0x1998   :  { %v1187_v12 = vmul.f32 %v2760_v11, %v1146_v62 }
0x199a   :  { %v1189_v34 = vadd.f32 %v1187_v12, %v2696_v44 }
0x199c   :  { %v1190_v35 = vpack.c.bf16 %v1189_v34, %v1188_v33 }
0x199e   :  { %1199 = vmatmul.bf16.vlgmr.msrb.gmra.mxu0 %v1190_v35 }
0x199f   :  { %1366 = vmatpush.bf16.msrb.mxu0 %v1712_v1 }
0x19a3   :  { %1367 = vmatpush.bf16.msrb.mxu0 %v1713_v39 }
0x19a7   :  { %1368 = vmatpush.bf16.msrb.mxu0 %v2392_v16 }
0x19ab   :  { %1369 = vmatpush.bf16.msrb.mxu0 %v2395_v2 }
0x19af   :  { %1370 = vmatpush.bf16.msrb.mxu0 %v2398_v3 }
0x19b3   :  { %1371 = vmatpush.bf16.msrb.mxu0 %v2401_v36  ;;  %v1714_v36 = vld [vmem:[#allocation10 + $0x38] sm:$0xff] }
0x19b7   :  { %1372 = vmatpush.bf16.msrb.mxu0 %v2404_v13  ;;  %v1715_v13 = vld [vmem:[#allocation10 + $0x30] sm:$0xff] }
0x19bb   :  { %1373 = vmatpush.bf16.msrb.mxu0 %v2407_v20  ;;  %v1716_v20 = vld [vmem:[#allocation10 + $0x28] sm:$0xff] }
0x1a1b   :  { %v1200_v42 = vpop.f32.mrf.mxu0 }
0x1a1c   :  { %v1201_v45 = vadd.f32 %v2452_v58, %v1200_v42 }
0x1a1e   :  { %v1205_v4 = vadd.f32 %v1201_v45, %v1166_v32 }
0x1a20   :  { %1670 = vtanh.f32 %v1205_v4 }
0x1a23   :  { %v1202_v17 = vpop.f32.mrf.mxu0 }
0x1a24   :  { %v1203_v37 = vadd.f32 %v2452_v58, %v1202_v17 }
0x1a26   :  { %v1206_v40 = vadd.f32 %v1203_v37, %v1166_v32  ;;  %v1671_v16 = vpop.eup %1670 }
0x1a28   :  { %1672 = vtanh.f32 %v1206_v40 }
0x1a2e   :  { %v1673_v2 = vpop.eup %1672 }
0x1a2f   :  { %v1209_v3 = vpack.c.bf16 %v1673_v2, %v1671_v16 }
0x1a31   :  { %1218 = vmatmul.bf16.vlgmr.msrb.gmra.mxu1 %v1209_v3 }
0x1a32   :  { %1385 = vmatpush.bf16.msrb.mxu1 %v1714_v36 }
0x1a36   :  { %1386 = vmatpush.bf16.msrb.mxu1 %v1715_v13 }
0x1a3a   :  { %1387 = vmatpush.bf16.msrb.mxu1 %v1716_v20 }
0x1a3e   :  { %1388 = vmatpush.bf16.msrb.mxu1 %v2416_v0 }
0x1a42   :  { %1389 = vmatpush.bf16.msrb.mxu1 %v2419_v38 }
0x1a46   :  { %1390 = vmatpush.bf16.msrb.mxu1 %v2422_v19  ;;  %v1717_v19 = vld [vmem:[#allocation7 + $0x28] sm:$0xff] }
0x1a4a   :  { %1391 = vmatpush.bf16.msrb.mxu1 %v2462_v8 }
0x1a4e   :  { %1392 = vmatpush.bf16.msrb.mxu1 %v2465_v9 }
0x1aae   :  { %v1219_v18 = vpop.f32.mrf.mxu1 }
0x1aaf   :  { %v1220_v41 = vadd.f32 %v2478_v53, %v1219_v18 }
0x1ab1   :  { %v1225_v48 = vmul.f32 %v1224_v60, %v1220_v41  ;;  %v1265_v15 = vadd.f32 %v1220_v41, %v2756_v28 }
0x1ab3   :  { %v1227_v26 = vadd.f32 %v1225_v48, %v2690_v7  ;;  %v1267_v22 = vmul.f32 2.0, %v1265_v15  ;;  %v1726_v48 = vld [vmem:[#allocation9] ss:$0 sm:$0xff] }
0x1ab5   :  { %v1269_v29 = vadd.f32 %v1267_v22, %v2727_v31 }
0x1ab6   :  { %v1221_v46 = vpop.f32.mrf.mxu1 }
0x1ab7   :  { %v1222_v61 = vadd.f32 %v2478_v53, %v1221_v46 }
0x1ab9   :  { %v1226_v43 = vmul.f32 %v1224_v60, %v1222_v61  ;;  %v1266_v24 = vadd.f32 %v1222_v61, %v2760_v11 }
0x1abb   :  { %v1228_v0 = vadd.f32 %v1226_v43, %v2696_v44  ;;  %v1268_v33 = vmul.f32 2.0, %v1266_v24  ;;  %v1341_v43 = vstv %s1320_s0 }
0x1abd   :  { %v1229_v38 = vpack.c.bf16 %v1228_v0, %v1227_v26  ;;  %v1270_v28 = vadd.f32 %v1268_v33, %v2731_v57 }
0x1abf   :  { %1238 = vmatmul.bf16.vlgmr.msrb.gmra.mxu2 %v1229_v38 }
0x1ac0   :  { %1405 = vmatpush.bf16.msrb.mxu2 %v1712_v1 }
0x1ac4   :  { %1406 = vmatpush.bf16.msrb.mxu2 %v1713_v39 }
0x1ac8   :  { %1407 = vmatpush.bf16.msrb.mxu2 %v1717_v19 }
0x1acc   :  { %1408 = vmatpush.bf16.msrb.mxu2 %v1718_v47 }
0x1ad0   :  { %1409 = vmatpush.bf16.msrb.mxu2 %v1719_v54 }
0x1ad4   :  { %1410 = vmatpush.bf16.msrb.mxu2 %v1720_v55 }
0x1ad8   :  { %1411 = vmatpush.bf16.msrb.mxu2 %v1721_v5  ;;  %v1727_v5 = vld [vmem:[%s2850_s5] ss:$0 sm:$0xff]  ;;  %s1439_s5 = smul.f32 0.16666667, %s2811_s29 }
0x1adc   :  { %1412 = vmatpush.bf16.msrb.mxu2 %v1722_v21 }
0x1b42   :  { %v1239_v62 = vpop.f32.mrf.mxu2 }
0x1b43   :  { %v1240_v25 = vadd.f32 %v2452_v58, %v1239_v62 }
0x1b45   :  { %v1245_v49 = vadd.f32 %v1244_v56, %v1240_v25 }
0x1b47   :  { %1674 = vtanh.f32 %v1245_v49 }
0x1b4a   :  { %v1241_v52 = vpop.f32.mrf.mxu2 }
0x1b4b   :  { %v1242_v6 = vadd.f32 %v2452_v58, %v1241_v52 }
0x1b4d   :  { %v1246_v59 = vadd.f32 %v1244_v56, %v1242_v6  ;;  %v1675_v63 = vpop.eup %1674 }
0x1b4f   :  { %1676 = vtanh.f32 %v1246_v59 }
0x1b55   :  { %v1677_v30 = vpop.eup %1676 }
0x1b56   :  { %v1249_v32 = vpack.c.bf16 %v1677_v30, %v1675_v63 }
0x1b58   :  { %1258 = vmatmul.bf16.vlgmr.msrb.gmra.mxu3 %v1249_v32 }
0x1b59   :  { %1425 = vmatpush.bf16.msrb.mxu3 %v1714_v36 }
0x1b5d   :  { %1426 = vmatpush.bf16.msrb.mxu3 %v1715_v13 }
0x1b61   :  { %1427 = vmatpush.bf16.msrb.mxu3 %v1716_v20 }
0x1b65   :  { %1428 = vmatpush.bf16.msrb.mxu3 %v1723_v50 }
0x1b69   :  { %1429 = vmatpush.bf16.msrb.mxu3 %v1724_v14 }
0x1b6d   :  { %1430 = vmatpush.bf16.msrb.mxu3 %v1725_v51 }
0x1b71   :  { %1431 = vmatpush.bf16.msrb.mxu3 %v2462_v8 }
0x1b75   :  { %1432 = vmatpush.bf16.msrb.mxu3 %v2465_v9 }
0x1bdb   :  { %v1259_v23 = vpop.f32.mrf.mxu3 }
0x1bdc   :  { %v1260_v27 = vadd.f32 %v2478_v53, %v1259_v23 }
0x1bde   :  { %v1271_v12 = vadd.f32 %v1269_v29, %v1260_v27  ;;  %v1399_v29 = vstv %s2811_s29 }
0x1be0   :  { %v1274_v34 = vmul.f32 %v1273_v10, %v1271_v12 }
0x1be2   :  { %v2794_v35 = vadd.f32 %v1274_v34, %v2690_v7 }
0x1be3   :  { %v1261_v8 = vpop.f32.mrf.mxu3 }
0x1be4   :  { %1279 = vst [vmem:[#allocation12 + $0x60] sm:$0xff] %v2794_v35  ;;  %v1262_v9 = vadd.f32 %v2478_v53, %v1261_v8 }
0x1be6   :  { %v1272_v1 = vadd.f32 %v1270_v28, %v1262_v9 }
0x1be8   :  { %v1275_v11 = vmul.f32 %v1273_v10, %v1272_v1 }
0x1bea   :  { %v2800_v39 = vadd.f32 %v1275_v11, %v2696_v44 }
0x1bec   :  { %1280 = vst [vmem:[#allocation12 + $0x68] sm:$0xff] %v2800_v39  ;;  %v1285_v31 = vpack.c.bf16 %v2800_v39, %v2794_v35 }
0x1bee   :  { %1294 = vmatmul.bf16.vlgmr.msra.gmra.mxu0 %v1285_v31  ;;  %v1419_v31 = vstv %s2807_s28 }
0x1c6b   :  { %v1295_v7 = vpop.f32.mrf.mxu0 }
0x1c6c   :  { %v1296_v42 = vadd.f32 %v2452_v58, %v1295_v7 }
0x1c6e   :  { %v1301_v45 = vadd.f32 %v1296_v42, %v1244_v56 }
0x1c70   :  { %1678 = vtanh.f32 %v1301_v45 }
0x1c73   :  { %v1297_v4 = vpop.f32.mrf.mxu0 }
0x1c74   :  { %v1298_v17 = vadd.f32 %v2452_v58, %v1297_v4  ;;  %v1321_v58 = vstv %s1284_s30 }
0x1c76   :  { %v1302_v57 = vadd.f32 %v1298_v17, %v1244_v56  ;;  %v1679_v37 = vpop.eup %1678 }
0x1c78   :  { %1680 = vtanh.f32 %v1302_v57 }
0x1c7e   :  { %v1681_v44 = vpop.eup %1680 }
0x1c7f   :  { %v1305_v40 = vpack.c.bf16 %v1681_v44, %v1679_v37 }
0x1c81   :  { %1314 = vmatmul.bf16.vlgmr.msra.gmra.mxu1 %v1305_v40 }
0x1cfe   :  { %v1315_v16 = vpop.f32.mrf.mxu1 }
0x1cff   :  { %v2815_v2 = vadd.f32 %v2478_v53, %v1315_v16 }
0x1d01   :  { %v1322_v36 = vmul.f32 %v1321_v58, %v2815_v2 }
0x1d03   :  { %v1324_v18 = vadd.f32 %v1322_v36, %v2794_v35 }
0x1d06   :  { %v1317_v3 = vpop.f32.mrf.mxu1 }
0x1d07   :  { %v2819_v13 = vadd.f32 %v2478_v53, %v1317_v3 }
0x1d09   :  { %v1323_v20 = vmul.f32 %v1321_v58, %v2819_v13 }
0x1d0b   :  { %v1325_v41 = vadd.f32 %v1323_v20, %v2800_v39  ;;  %v1448_v20 = vstv %s1439_s5 }
0x1d0d   :  { %v1326_v60 = vpack.c.bf16 %v1325_v41, %v1324_v18 }
0x1d0f   :  { %1335 = vmatmul.bf16.vlgmr.msra.gmra.mxu2 %v1326_v60 }
0x1d92   :  { %v1336_v46 = vpop.f32.mrf.mxu2 }
0x1d93   :  { %v1337_v61 = vadd.f32 %v1726_v48, %v1336_v46 }
0x1d95   :  { %v1342_v26 = vadd.f32 %v1341_v43, %v1337_v61 }
0x1d97   :  { %1682 = vtanh.f32 %v1342_v26 }
0x1d9a   :  { %v1338_v0 = vpop.f32.mrf.mxu2 }
0x1d9b   :  { %v1339_v38 = vadd.f32 %v1726_v48, %v1338_v0 }
0x1d9d   :  { %v1343_v19 = vadd.f32 %v1341_v43, %v1339_v38  ;;  %v1683_v53 = vpop.eup %1682 }
0x1d9f   :  { %1684 = vtanh.f32 %v1343_v19 }
0x1da5   :  { %v1685_v47 = vpop.eup %1684 }
0x1da6   :  { %v1346_v54 = vpack.c.bf16 %v1685_v47, %v1683_v53 }
0x1da8   :  { %1355 = vmatmul.bf16.vlgmr.msra.gmra.mxu3 %v1346_v54 }
0x1e2b   :  { %v1356_v55 = vpop.f32.mrf.mxu3 }
0x1e2c   :  { %v1357_v21 = vadd.f32 %v1727_v5, %v1356_v55 }
0x1e2e   :  { %v1361_v25 = vmul.f32 %v1357_v21, %v1321_v58 }
0x1e30   :  { %v1363_v52 = vadd.f32 %v1361_v25, %v2794_v35 }
0x1e33   :  { %v1358_v62 = vpop.f32.mrf.mxu3 }
0x1e34   :  { %v1359_v56 = vadd.f32 %v1727_v5, %v1358_v62 }
0x1e36   :  { %v1362_v49 = vmul.f32 %v1359_v56, %v1321_v58 }
0x1e38   :  { %v1364_v6 = vadd.f32 %v1362_v49, %v2800_v39 }
0x1e3a   :  { %v1365_v59 = vpack.c.bf16 %v1364_v6, %v1363_v52 }
0x1e3c   :  { %1374 = vmatmul.bf16.vlgmr.msrb.gmra.mxu0 %v1365_v59 }
0x1eb9   :  { %v1375_v63 = vpop.f32.mrf.mxu0 }
0x1eba   :  { %v1376_v30 = vadd.f32 %v1726_v48, %v1375_v63 }
0x1ebc   :  { %v1380_v32 = vadd.f32 %v1376_v30, %v1341_v43 }
0x1ebe   :  { %1686 = vtanh.f32 %v1380_v32 }
0x1ec1   :  { %v1377_v50 = vpop.f32.mrf.mxu0 }
0x1ec2   :  { %v1378_v14 = vadd.f32 %v1726_v48, %v1377_v50 }
0x1ec4   :  { %v1381_v51 = vadd.f32 %v1378_v14, %v1341_v43  ;;  %v1687_v15 = vpop.eup %1686 }
0x1ec6   :  { %1688 = vtanh.f32 %v1381_v51 }
0x1ecc   :  { %v1689_v22 = vpop.eup %1688 }
0x1ecd   :  { %v1384_v23 = vpack.c.bf16 %v1689_v22, %v1687_v15 }
0x1ecf   :  { %1393 = vmatmul.bf16.vlgmr.msrb.gmra.mxu1 %v1384_v23 }
0x1f4c   :  { %v1394_v24 = vpop.f32.mrf.mxu1 }
0x1f4d   :  { %v1395_v27 = vadd.f32 %v1727_v5, %v1394_v24 }
0x1f4f   :  { %v1400_v12 = vmul.f32 %v1399_v29, %v1395_v27  ;;  %v1440_v44 = vadd.f32 %v1395_v27, %v1357_v21 }
0x1f51   :  { %v1402_v8 = vadd.f32 %v1400_v12, %v2794_v35  ;;  %v1442_v40 = vmul.f32 2.0, %v1440_v44 }
0x1f53   :  { %v1444_v36 = vadd.f32 %v1442_v40, %v2815_v2 }
0x1f54   :  { %v1396_v10 = vpop.f32.mrf.mxu1 }
0x1f55   :  { %v1397_v33 = vadd.f32 %v1727_v5, %v1396_v10 }
0x1f57   :  { %v1401_v34 = vmul.f32 %v1399_v29, %v1397_v33  ;;  %v1441_v58 = vadd.f32 %v1397_v33, %v1359_v56 }
0x1f59   :  { %v1403_v9 = vadd.f32 %v1401_v34, %v2800_v39  ;;  %v1443_v41 = vmul.f32 2.0, %v1441_v58 }
0x1f5b   :  { %v1404_v28 = vpack.c.bf16 %v1403_v9, %v1402_v8  ;;  %v1445_v43 = vadd.f32 %v1443_v41, %v2819_v13 }
0x1f5d   :  { %1413 = vmatmul.bf16.vlgmr.msrb.gmra.mxu2 %v1404_v28 }
0x1fe0   :  { %v1414_v1 = vpop.f32.mrf.mxu2 }
0x1fe1   :  { %v1415_v11 = vadd.f32 %v1726_v48, %v1414_v1 }
0x1fe3   :  { %v1420_v7 = vadd.f32 %v1419_v31, %v1415_v11 }
0x1fe5   :  { %1690 = vtanh.f32 %v1420_v7 }
0x1fe8   :  { %v1416_v42 = vpop.f32.mrf.mxu2 }
0x1fe9   :  { %v1417_v45 = vadd.f32 %v1726_v48, %v1416_v42 }
0x1feb   :  { %v1421_v4 = vadd.f32 %v1419_v31, %v1417_v45  ;;  %v1691_v17 = vpop.eup %1690 }
0x1fed   :  { %1692 = vtanh.f32 %v1421_v4 }
0x1ff3   :  { %v1693_v57 = vpop.eup %1692 }
0x1ff4   :  { %v1424_v37 = vpack.c.bf16 %v1693_v57, %v1691_v17 }
0x1ff6   :  { %1433 = vmatmul.bf16.vlgmr.msrb.gmra.mxu3 %v1424_v37 }
0x2079   :  { %v1434_v16 = vpop.f32.mrf.mxu3 }
0x207a   :  { %v1435_v3 = vadd.f32 %v1727_v5, %v1434_v16 }
0x207c   :  { %v1446_v18 = vadd.f32 %v1444_v36, %v1435_v3 }
0x207e   :  { %v1449_v60 = vmul.f32 %v1448_v20, %v1446_v18 }
0x2080   :  { %v1451_v46 = vadd.f32 %v1449_v60, %v2794_v35 }
0x2081   :  { %v1436_v48 = vpop.f32.mrf.mxu3 }
0x2082   :  { %1454 = vst [vmem:[#allocation12 + $0x70] sm:$0xff] %v1451_v46  ;;  %v1437_v61 = vadd.f32 %v1727_v5, %v1436_v48 }
0x2084   :  { %v1447_v26 = vadd.f32 %v1445_v43, %v1437_v61 }
0x2086   :  { %v1450_v0 = vmul.f32 %v1448_v20, %v1447_v26 }
0x2088   :  { %v1452_v2 = vadd.f32 %v1450_v0, %v2800_v39 }
0x208a   :  { %1455 = vst [vmem:[#allocation12 + $0x78] sm:$0xff] %v1452_v2 }
0x208b   :  { %1468 = dma.vmem_to_hbm [thread:$0]  %s1461_s10, 2048, %s1463_s14, [#allocation6], %s1875_s12, %s1875_s12, %s1876_s13  }
0x208c   :  { %1868 = dma.done.wait [#allocation6], 2048  }
0x208d   :  { %1869 = vsyncadd [#allocation6], 4294965248 }
0x208e   :  { %1473 = vsyncpa [#allocation5], 1 }
0x208f   :  { %1474 = vsyncpa [#allocation8], 1 }
0x2090   :  { %1475 = vsyncpa [#allocation11], 1 }
0x2091   :  { %1476 = vsyncpa [#allocation6], 1 }

</bundles_post_ra>
